<compile_context>
chip_gen: v6e
topology: v6e:2x2x1
jax: 0.10.0
libtpu: 0.0.40
codegen_flags: <defaults>
</compile_context>

<pallas_src>
import functools
import math

import jax
import jax.numpy as jnp
from jax.experimental import pallas as pl
from jax.experimental.pallas import tpu as pltpu

LANE = 128


def _round_up(n, m):
    return ((n + m - 1) // m) * m


def _vmem_capacity_bytes():
    try:
        return int(pltpu.get_tpu_info().vmem_capacity_bytes)
    except Exception:
        return 64 * 1024 * 1024  # conservative: v7x per-TensorCore VMEM


def _pick_row_tile(n_rows, x_itemsize, block_rows):
    row_mult = 8 * max(1, 4 // x_itemsize)  # f32: 8, bf16: 16, int8/fp8: 32
    br = min(block_rows, _round_up(n_rows, row_mult))
    br = _round_up(br, row_mult)
    if br >= 128:
        br = _round_up(br, 128)  # fill the MXU M dimension
    return br, row_mult


def _select_tiles(n_rows, d_pad, h_pad, x_dtype, w_dtype, block_rows, hidden_tile):
    """Pick (row tile, hidden tile, vmem_limit_bytes) against the VMEM budget."""
    xb = jnp.dtype(x_dtype).itemsize
    wb = jnp.dtype(w_dtype).itemsize
    br, row_mult = _pick_row_tile(n_rows, xb, block_rows)

    vmem_cap = _vmem_capacity_bytes()
    budget = int(0.70 * vmem_cap)

    def footprint(br_, th_):
        f = 2 * br_ * d_pad * xb          # x tile (double-buffered)
        f += 2 * br_ * d_pad * xb         # out tile (double-buffered)
        f += br_ * d_pad * xb             # y = LayerNorm(x) scratch
        f += br_ * d_pad * 4              # f32 accumulator scratch
        f += 6 * d_pad * xb               # ln_w, ln_b, b2 (tiny)
        f += 2 * 2 * d_pad * th_ * wb     # w1 + w2 chunks, double-buffered
        f += 2 * th_ * wb                 # b1 chunk
        f += br_ * th_ * 4                # f32 GELU intermediate
        return f

    def pick_th(br_):
        # Largest multiple of 128 that divides h_pad, <= hidden_tile, fits budget.
        m_total = h_pad // 128
        best = 128
        for m in range(1, m_total + 1):
            th_ = 128 * m
            if (m_total % m == 0 and th_ <= hidden_tile
                    and footprint(br_, th_) <= budget):
                best = th_
        return best

    th = pick_th(br)
    while footprint(br, 128) > budget and br > row_mult:
        br = max(row_mult, _round_up(br // 2, row_mult))
        th = pick_th(br)

    # Megacore (v7x): only force a 2-step row grid when each half keeps an
    # MXU-sized (>=256-row) tile; on single-TC chips / small n it is overhead.
    if _round_up(n_rows, br) // br < 2 and n_rows >= 512:
        half = _round_up(pl.cdiv(n_rows, 2), max(row_mult, 128))
        if half >= 256:
            br = half

    vmem_limit = min(vmem_cap, max(32 * 1024 * 1024, int(1.3 * footprint(br, th))))
    return br, th, vmem_limit


def mlp_block_kernel(x_ref, lnw_ref, lnb_ref, w1_ref, b1_ref, w2_ref, b2_ref,
                     o_ref, y_ref, acc_ref, *, d_in, eps=1e-5):
    """Fused LayerNorm -> Linear1 -> GELU(erf) -> Linear2 -> residual.

    Grid: (row tiles [parallel], hidden chunks [arbitrary, innermost]).
    """
    k = pl.program_id(1)
    nk = pl.num_programs(1)

    @pl.when(k == 0)
    def _():
        # ---- LayerNorm once per row tile (masked over the real d_in lanes) ----
        xf = x_ref[...].astype(jnp.float32)
        d_pad = xf.shape[-1]
        inv_d = jnp.float32(1.0 / d_in)
        mean = jnp.sum(xf, axis=-1, keepdims=True) * inv_d
        centered = xf - mean
        if d_pad != d_in:
            lane = jax.lax.broadcasted_iota(jnp.int32, (1, d_pad), 1)
            centered = jnp.where(lane < d_in, centered, 0.0)
        var = jnp.sum(centered * centered, axis=-1, keepdims=True) * inv_d
        inv_std = jax.lax.rsqrt(var + jnp.float32(eps))
        # ln scale/bias are zero-padded, so padded lanes stay exactly zero.
        y = centered * inv_std * lnw_ref[...].astype(jnp.float32) \
            + lnb_ref[...].astype(jnp.float32)
        y_ref[...] = y.astype(y_ref.dtype)
        acc_ref[...] = jnp.zeros_like(acc_ref)

    # ---- per hidden chunk: h_k = GELU(y @ w1[:,k] + b1[k]); acc += h_k @ w2[k,:]
    h = jnp.dot(y_ref[...], w1_ref[...], preferred_element_type=jnp.float32)
    h = h + b1_ref[...].astype(jnp.float32)
    # exact (erf) GELU: matches torch nn.GELU() default
    h = 0.5 * h * (1.0 + jax.lax.erf(h * jnp.float32(1.0 / math.sqrt(2.0))))
    acc_ref[...] += jnp.dot(h.astype(w2_ref.dtype), w2_ref[...],
                            preferred_element_type=jnp.float32)

    @pl.when(k == nk - 1)
    def _():
        out = acc_ref[...] + b2_ref[...].astype(jnp.float32) \
              + x_ref[...].astype(jnp.float32)
        o_ref[...] = out.astype(o_ref.dtype)


def pad_params(params):
    """Zero-pad weights/biases to lane multiples ONCE (hoisted out of forward)."""
    d_in, hidden = params["w1"].shape
    assert params["w2"].shape == (hidden, d_in), "residual requires d_out == d_in"
    d_pad = _round_up(d_in, LANE)
    h_pad = _round_up(hidden, LANE)

    def pad2(a, rows, cols):
        return jnp.pad(a, ((0, rows - a.shape[0]), (0, cols - a.shape[1])))

    return {
        "d_in": d_in,
        "hidden": hidden,
        "ln_w": pad2(params["ln_w"].reshape(1, -1), 1, d_pad),
        "ln_b": pad2(params["ln_b"].reshape(1, -1), 1, d_pad),
        "w1": pad2(params["w1"], d_pad, h_pad),
        "b1": pad2(params["b1"].reshape(1, -1), 1, h_pad),
        "w2": pad2(params["w2"], h_pad, d_pad),
        "b2": pad2(params["b2"].reshape(1, -1), 1, d_pad),
    }


def mlp_block_forward(x, padded_params, *, block_rows=512, hidden_tile=2048,
                      eps=1e-5):
    """x: [..., d_in] -> [..., d_in]  (MlpBlock forward).

    `padded_params` comes from pad_params(...) (pad once, reuse every call).
    """
    p = padded_params
    d_in, hidden = p["d_in"], p["hidden"]
    d_pad, h_pad = p["w1"].shape

    orig_shape = x.shape
    assert orig_shape[-1] == d_in
    x2d = x.reshape(-1, d_in)
    n = x2d.shape[0]

    br, th, vmem_limit = _select_tiles(
        n, d_pad, h_pad, x.dtype, p["w1"].dtype, block_rows, hidden_tile)
    n_pad = _round_up(n, br)
    x2d = jnp.pad(x2d, ((0, n_pad - n), (0, d_pad - d_in)))

    grid = (n_pad // br, h_pad // th)

    # Advisory cost estimate (weights are re-streamed once per row tile).
    w_bytes = sum(int(p[k_].size) * p[k_].dtype.itemsize
                  for k_ in ("w1", "w2", "b1", "b2", "ln_w", "ln_b"))
    cost = pl.CostEstimate(
        flops=4 * n_pad * d_pad * h_pad,
        transcendentals=n_pad * h_pad,
        bytes_accessed=2 * n_pad * d_pad * x.dtype.itemsize + grid[0] * w_bytes,
    )

    kern = functools.partial(mlp_block_kernel, d_in=d_in, eps=eps)
    row_spec = pl.BlockSpec((br, d_pad), lambda i, k: (i, 0))

    def run(single_buffer_consts):
        def const_spec(shape):
            idx = lambda i, k: (0,) * len(shape)
            if single_buffer_consts:
                # constant index across the whole grid -> double-buffering buys
                # nothing; keep a single VMEM copy.
                return pl.BlockSpec(shape, idx, pipeline_mode=pl.Buffered(1))
            return pl.BlockSpec(shape, idx)

        return pl.pallas_call(
            kern,
            out_shape=jax.ShapeDtypeStruct((n_pad, d_pad), x.dtype),
            grid_spec=pltpu.PrefetchScalarGridSpec(
                num_scalar_prefetch=0,
                grid=grid,
                in_specs=[
                    row_spec,                                    # x tile
                    const_spec((1, d_pad)),                      # ln_w
                    const_spec((1, d_pad)),                      # ln_b
                    pl.BlockSpec((d_pad, th), lambda i, k: (0, k)),  # w1 chunk
                    pl.BlockSpec((1, th), lambda i, k: (0, k)),      # b1 chunk
                    pl.BlockSpec((th, d_pad), lambda i, k: (k, 0)),  # w2 chunk
                    const_spec((1, d_pad)),                      # b2
                ],
                out_specs=row_spec,
                scratch_shapes=[
                    pltpu.VMEM((br, d_pad), x.dtype),      # y = LayerNorm(x)
                    pltpu.VMEM((br, d_pad), jnp.float32),  # output accumulator
                ],
            ),
            compiler_params=pltpu.CompilerParams(
                dimension_semantics=("parallel", "arbitrary"),
                vmem_limit_bytes=vmem_limit,
            ),
            cost_estimate=cost,
        )(x2d, p["ln_w"], p["ln_b"], p["w1"], p["b1"], p["w2"], p["b2"])

    try:
        out = run(True)
    except Exception:
        # pipeline_mode=pl.Buffered(1) not supported on this build; the operands
        # involved are tiny (1, d_pad) vectors, so default buffering is fine.
        out = run(False)

    return out[:n, :d_in].reshape(orig_shape)


def init_params(key, d_in, hidden, dtype=jnp.float32):
    """PyTorch-nn.Linear-style uniform init; W stored as [d_in, d_out]."""
    def linear(k, di, do):
        kw, kb = jax.random.split(k)
        bound = 1.0 / math.sqrt(di)
        w = jax.random.uniform(kw, (di, do), dtype, -bound, bound)
        b = jax.random.uniform(kb, (do,), dtype, -bound, bound)
        return w, b

    k1, k2 = jax.random.split(key)
    params = {
        "ln_w": jnp.ones((d_in,), dtype),
        "ln_b": jnp.zeros((d_in,), dtype),
    }
    params["w1"], params["b1"] = linear(k1, d_in, hidden)
    params["w2"], params["b2"] = linear(k2, hidden, d_in)
    return params


def mlp_block_ref(x, params, eps=1e-5):
    """Pure-JAX reference (matches the PyTorch MlpBlock forward)."""
    m = jnp.mean(x, -1, keepdims=True)
    v = jnp.mean((x - m) ** 2, -1, keepdims=True)
    y = (x - m) / jnp.sqrt(v + eps) * params["ln_w"] + params["ln_b"]
    h = y @ params["w1"] + params["b1"]
    h = 0.5 * h * (1.0 + jax.lax.erf(h / jnp.sqrt(2.0)))
    return x + (h @ params["w2"] + params["b2"])


if __name__ == "__main__":
    d_in, hidden = 16, 32
    key = jax.random.PRNGKey(0)
    kx, kp = jax.random.split(key)

    # x: (2, 4, 16, d_in=16) -> 128 rows flattened inside the wrapper
    x = jax.random.normal(kx, (2, 4, 16, d_in), dtype=jnp.float32)
    params = init_params(kp, d_in, hidden)
    padded = pad_params(params)  # hoisted: pad weights once, reuse every forward

    out = mlp_block_forward(x, padded)
    out = jax.block_until_ready(out)

    ref = mlp_block_ref(x, params)
    assert out.shape == x.shape
    err = float(jnp.max(jnp.abs(out - ref)))
    assert jnp.allclose(out, ref, atol=1e-4, rtol=1e-4), err

    print("KERNEL_OK")
</pallas_src>

<mosaic_0001>
module attributes {stable_mosaic.version = 11 : i64} {
  func.func @mlp_block_kernel(%arg0: i32, %arg1: i32, %arg2: memref<128x128xf32, #tpu.memory_space<vmem>>, %arg3: memref<1x128xf32, #tpu.memory_space<vmem>>, %arg4: memref<1x128xf32, #tpu.memory_space<vmem>>, %arg5: memref<128x128xf32, #tpu.memory_space<vmem>>, %arg6: memref<1x128xf32, #tpu.memory_space<vmem>>, %arg7: memref<128x128xf32, #tpu.memory_space<vmem>>, %arg8: memref<1x128xf32, #tpu.memory_space<vmem>>, %arg9: memref<128x128xf32, #tpu.memory_space<vmem>>, %arg10: memref<128x128xf32, #tpu.memory_space<vmem>>, %arg11: memref<128x128xf32, #tpu.memory_space<vmem>>) attributes {dimension_semantics = [#tpu.dimension_semantics<parallel>, #tpu.dimension_semantics<arbitrary>], iteration_bounds = array<i64: 1, 1>, scalar_prefetch = 0 : i64, scratch_operands = 2 : i64, tpu.core_type = #tpu.core_type<tc>, window_params = [{transform_indices = @transform_0, window_bounds = array<i64: 128, 128>}, {pipeline_mode = #tpu.pipeline_mode<synchronous>, transform_indices = @transform_1, window_bounds = array<i64: 1, 128>}, {pipeline_mode = #tpu.pipeline_mode<synchronous>, transform_indices = @transform_2, window_bounds = array<i64: 1, 128>}, {transform_indices = @transform_3, window_bounds = array<i64: 128, 128>}, {transform_indices = @transform_4, window_bounds = array<i64: 1, 128>}, {transform_indices = @transform_5, window_bounds = array<i64: 128, 128>}, {pipeline_mode = #tpu.pipeline_mode<synchronous>, transform_indices = @transform_6, window_bounds = array<i64: 1, 128>}, {transform_indices = @transform_7, window_bounds = array<i64: 128, 128>}]} {
    %c0_i32 = arith.constant 0 : i32
    %0 = arith.cmpi eq, %arg1, %c0_i32 : i32
    %1 = arith.extui %0 : i1 to i32
    %c0_i32_0 = arith.constant 0 : i32
    %2 = arith.cmpi ne, %1, %c0_i32_0 : i32
    scf.if %2 {
      %c0_18 = arith.constant 0 : index
      %c0_19 = arith.constant 0 : index
      %25 = vector.load %arg2[%c0_18, %c0_19] : memref<128x128xf32, #tpu.memory_space<vmem>>, vector<128x128xf32>
      %cst_20 = arith.constant dense<0.000000e+00> : vector<128xf32>
      %26 = vector.multi_reduction <add>, %25, %cst_20 [1] : vector<128x128xf32> to vector<128xf32>
      %27 = vector.shape_cast %26 : vector<128xf32> to vector<128x1xf32>
      %cst_21 = arith.constant 6.250000e-02 : f32
      %28 = vector.broadcast %cst_21 : f32 to vector<128x1xf32>
      %29 = arith.mulf %27, %28 : vector<128x1xf32>
      %30 = vector.broadcast %29 : vector<128x1xf32> to vector<128x128xf32>
      %31 = arith.subf %25, %30 : vector<128x128xf32>
      %32 = tpu.iota {dimensions = array<i32: 1>} : vector<1x128xi32>
      %c16_i32 = arith.constant 16 : i32
      %33 = vector.broadcast %c16_i32 : i32 to vector<1x128xi32>
      %34 = arith.cmpi slt, %32, %33 : vector<1x128xi32>
      %cst_22 = arith.constant 0.000000e+00 : f32
      %35 = vector.shape_cast %34 : vector<1x128xi1> to vector<1x128xi1>
      %36 = vector.broadcast %35 : vector<1x128xi1> to vector<128x128xi1>
      %37 = vector.broadcast %cst_22 : f32 to vector<128x128xf32>
      %38 = arith.select %36, %31, %37 : vector<128x128xi1>, vector<128x128xf32>
      %39 = arith.mulf %38, %38 : vector<128x128xf32>
      %cst_23 = arith.constant dense<0.000000e+00> : vector<128xf32>
      %40 = vector.multi_reduction <add>, %39, %cst_23 [1] : vector<128x128xf32> to vector<128xf32>
      %41 = vector.shape_cast %40 : vector<128xf32> to vector<128x1xf32>
      %cst_24 = arith.constant 6.250000e-02 : f32
      %42 = vector.broadcast %cst_24 : f32 to vector<128x1xf32>
      %43 = arith.mulf %41, %42 : vector<128x1xf32>
      %cst_25 = arith.constant 9.99999974E-6 : f32
      %44 = vector.broadcast %cst_25 : f32 to vector<128x1xf32>
      %45 = arith.addf %43, %44 : vector<128x1xf32>
      %46 = math.rsqrt %45 : vector<128x1xf32>
      %47 = vector.broadcast %46 : vector<128x1xf32> to vector<128x128xf32>
      %48 = arith.mulf %38, %47 : vector<128x128xf32>
      %c0_26 = arith.constant 0 : index
      %c0_27 = arith.constant 0 : index
      %49 = vector.load %arg3[%c0_26, %c0_27] : memref<1x128xf32, #tpu.memory_space<vmem>>, vector<1x128xf32>
      %50 = vector.broadcast %49 : vector<1x128xf32> to vector<128x128xf32>
      %51 = arith.mulf %48, %50 : vector<128x128xf32>
      %c0_28 = arith.constant 0 : index
      %c0_29 = arith.constant 0 : index
      %52 = vector.load %arg4[%c0_28, %c0_29] : memref<1x128xf32, #tpu.memory_space<vmem>>, vector<1x128xf32>
      %53 = vector.broadcast %52 : vector<1x128xf32> to vector<128x128xf32>
      %54 = arith.addf %51, %53 : vector<128x128xf32>
      %c0_30 = arith.constant 0 : index
      %c0_31 = arith.constant 0 : index
      %55 = vector.load %arg10[%c0_30, %c0_31] : memref<128x128xf32, #tpu.memory_space<vmem>>, vector<128x128xf32>
      tpu.vector_store %arg10[%c0_30, %c0_31], %54 {strides = array<i32>} : memref<128x128xf32, #tpu.memory_space<vmem>>, vector<128x128xf32>,
      %cst_32 = arith.constant 0.000000e+00 : f32
      %56 = vector.broadcast %cst_32 : f32 to vector<128x128xf32>
      %c0_33 = arith.constant 0 : index
      %c0_34 = arith.constant 0 : index
      %57 = vector.load %arg11[%c0_33, %c0_34] : memref<128x128xf32, #tpu.memory_space<vmem>>, vector<128x128xf32>
      tpu.vector_store %arg11[%c0_33, %c0_34], %56 {strides = array<i32>} : memref<128x128xf32, #tpu.memory_space<vmem>>, vector<128x128xf32>,
    } else {
    }
    %c0 = arith.constant 0 : index
    %c0_1 = arith.constant 0 : index
    %3 = vector.load %arg10[%c0, %c0_1] : memref<128x128xf32, #tpu.memory_space<vmem>>, vector<128x128xf32>
    %c0_2 = arith.constant 0 : index
    %c0_3 = arith.constant 0 : index
    %4 = vector.load %arg5[%c0_2, %c0_3] : memref<128x128xf32, #tpu.memory_space<vmem>>, vector<128x128xf32>
    %cst = arith.constant dense<0.000000e+00> : vector<128x128xf32>
    %5 = tpu.matmul %3, %4, %cst {dimension_numbers = #tpu.dot_dimension_numbers<[1], [0], [0], [1], [0, 0, 1, 1], [], []>} : vector<128x128xf32>, vector<128x128xf32>, vector<128x128xf32> -> vector<128x128xf32>
    %c0_4 = arith.constant 0 : index
    %c0_5 = arith.constant 0 : index
    %6 = vector.load %arg6[%c0_4, %c0_5] : memref<1x128xf32, #tpu.memory_space<vmem>>, vector<1x128xf32>
    %7 = vector.broadcast %6 : vector<1x128xf32> to vector<128x128xf32>
    %8 = arith.addf %5, %7 : vector<128x128xf32>
    %cst_6 = arith.constant 5.000000e-01 : f32
    %9 = vector.broadcast %cst_6 : f32 to vector<128x128xf32>
    %10 = arith.mulf %9, %8 : vector<128x128xf32>
    %cst_7 = arith.constant 0.707106769 : f32
    %11 = vector.broadcast %cst_7 : f32 to vector<128x128xf32>
    %12 = arith.mulf %8, %11 : vector<128x128xf32>
    %13 = math.erf %12 : vector<128x128xf32>
    %cst_8 = arith.constant 1.000000e+00 : f32
    %14 = vector.broadcast %cst_8 : f32 to vector<128x128xf32>
    %15 = arith.addf %14, %13 : vector<128x128xf32>
    %16 = arith.mulf %10, %15 : vector<128x128xf32>
    %c0_9 = arith.constant 0 : index
    %c0_10 = arith.constant 0 : index
    %17 = vector.load %arg11[%c0_9, %c0_10] : memref<128x128xf32, #tpu.memory_space<vmem>>, vector<128x128xf32>
    %c0_11 = arith.constant 0 : index
    %c0_12 = arith.constant 0 : index
    %18 = vector.load %arg7[%c0_11, %c0_12] : memref<128x128xf32, #tpu.memory_space<vmem>>, vector<128x128xf32>
    %cst_13 = arith.constant dense<0.000000e+00> : vector<128x128xf32>
    %19 = tpu.matmul %16, %18, %cst_13 {dimension_numbers = #tpu.dot_dimension_numbers<[1], [0], [0], [1], [0, 0, 1, 1], [], []>} : vector<128x128xf32>, vector<128x128xf32>, vector<128x128xf32> -> vector<128x128xf32>
    %20 = arith.addf %17, %19 : vector<128x128xf32>
    %c0_14 = arith.constant 0 : index
    %c0_15 = arith.constant 0 : index
    %21 = vector.load %arg11[%c0_14, %c0_15] : memref<128x128xf32, #tpu.memory_space<vmem>>, vector<128x128xf32>
    tpu.vector_store %arg11[%c0_14, %c0_15], %20 {strides = array<i32>} : memref<128x128xf32, #tpu.memory_space<vmem>>, vector<128x128xf32>,
    %c0_i32_16 = arith.constant 0 : i32
    %22 = arith.cmpi eq, %arg1, %c0_i32_16 : i32
    %23 = arith.extui %22 : i1 to i32
    %c0_i32_17 = arith.constant 0 : i32
    %24 = arith.cmpi ne, %23, %c0_i32_17 : i32
    scf.if %24 {
      %c0_18 = arith.constant 0 : index
      %c0_19 = arith.constant 0 : index
      %25 = vector.load %arg11[%c0_18, %c0_19] : memref<128x128xf32, #tpu.memory_space<vmem>>, vector<128x128xf32>
      %c0_20 = arith.constant 0 : index
      %c0_21 = arith.constant 0 : index
      %26 = vector.load %arg8[%c0_20, %c0_21] : memref<1x128xf32, #tpu.memory_space<vmem>>, vector<1x128xf32>
      %27 = vector.broadcast %26 : vector<1x128xf32> to vector<128x128xf32>
      %28 = arith.addf %25, %27 : vector<128x128xf32>
      %c0_22 = arith.constant 0 : index
      %c0_23 = arith.constant 0 : index
      %29 = vector.load %arg2[%c0_22, %c0_23] : memref<128x128xf32, #tpu.memory_space<vmem>>, vector<128x128xf32>
      %30 = arith.addf %28, %29 : vector<128x128xf32>
      %c0_24 = arith.constant 0 : index
      %c0_25 = arith.constant 0 : index
      %31 = vector.load %arg9[%c0_24, %c0_25] : memref<128x128xf32, #tpu.memory_space<vmem>>, vector<128x128xf32>
      tpu.vector_store %arg9[%c0_24, %c0_25], %30 {strides = array<i32>} : memref<128x128xf32, #tpu.memory_space<vmem>>, vector<128x128xf32>,
    } else {
    }
    return
  }
  func.func @transform_0(%arg0: i32, %arg1: i32) -> (i32, i32) {
    %c0_i32 = arith.constant 0 : i32
    %c0_i32_0 = arith.constant 0 : i32
    return %arg0, %c0_i32 : i32, i32
  }
  func.func @transform_1(%arg0: i32, %arg1: i32) -> (i32, i32) {
    %c0_i32 = arith.constant 0 : i32
    %c0_i32_0 = arith.constant 0 : i32
    %c0_i32_1 = arith.constant 0 : i32
    return %c0_i32, %c0_i32_0 : i32, i32
  }
  func.func @transform_2(%arg0: i32, %arg1: i32) -> (i32, i32) {
    %c0_i32 = arith.constant 0 : i32
    %c0_i32_0 = arith.constant 0 : i32
    %c0_i32_1 = arith.constant 0 : i32
    return %c0_i32, %c0_i32_0 : i32, i32
  }
  func.func @transform_3(%arg0: i32, %arg1: i32) -> (i32, i32) {
    %c0_i32 = arith.constant 0 : i32
    %c0_i32_0 = arith.constant 0 : i32
    return %c0_i32, %arg1 : i32, i32
  }
  func.func @transform_4(%arg0: i32, %arg1: i32) -> (i32, i32) {
    %c0_i32 = arith.constant 0 : i32
    %c0_i32_0 = arith.constant 0 : i32
    return %c0_i32, %arg1 : i32, i32
  }
  func.func @transform_5(%arg0: i32, %arg1: i32) -> (i32, i32) {
    %c0_i32 = arith.constant 0 : i32
    %c0_i32_0 = arith.constant 0 : i32
    return %arg1, %c0_i32 : i32, i32
  }
  func.func @transform_6(%arg0: i32, %arg1: i32) -> (i32, i32) {
    %c0_i32 = arith.constant 0 : i32
    %c0_i32_0 = arith.constant 0 : i32
    %c0_i32_1 = arith.constant 0 : i32
    return %c0_i32, %c0_i32_0 : i32, i32
  }
  func.func @transform_7(%arg0: i32, %arg1: i32) -> (i32, i32) {
    %c0_i32 = arith.constant 0 : i32
    %c0_i32_0 = arith.constant 0 : i32
    return %arg0, %c0_i32 : i32, i32
  }
}

module attributes {stable_mosaic.version = 11 : i64} {
  func.func @mlp_block_kernel(%arg0: i32, %arg1: i32, %arg2: memref<128x128xf32, #tpu.memory_space<vmem>>, %arg3: memref<1x128xf32, #tpu.memory_space<vmem>>, %arg4: memref<1x128xf32, #tpu.memory_space<vmem>>, %arg5: memref<128x128xf32, #tpu.memory_space<vmem>>, %arg6: memref<1x128xf32, #tpu.memory_space<vmem>>, %arg7: memref<128x128xf32, #tpu.memory_space<vmem>>, %arg8: memref<1x128xf32, #tpu.memory_space<vmem>>, %arg9: memref<128x128xf32, #tpu.memory_space<vmem>>, %arg10: memref<128x128xf32, #tpu.memory_space<vmem>>, %arg11: memref<128x128xf32, #tpu.memory_space<vmem>>) attributes {dimension_semantics = [#tpu.dimension_semantics<parallel>, #tpu.dimension_semantics<arbitrary>], iteration_bounds = array<i64: 1, 1>, scalar_prefetch = 0 : i64, scratch_operands = 2 : i64, tpu.core_type = #tpu.core_type<tc>, window_params = [{transform_indices = @transform_0, window_bounds = array<i64: 128, 128>}, {pipeline_mode = #tpu.pipeline_mode<synchronous>, transform_indices = @transform_1, window_bounds = array<i64: 1, 128>}, {pipeline_mode = #tpu.pipeline_mode<synchronous>, transform_indices = @transform_2, window_bounds = array<i64: 1, 128>}, {transform_indices = @transform_3, window_bounds = array<i64: 128, 128>}, {transform_indices = @transform_4, window_bounds = array<i64: 1, 128>}, {transform_indices = @transform_5, window_bounds = array<i64: 128, 128>}, {pipeline_mode = #tpu.pipeline_mode<synchronous>, transform_indices = @transform_6, window_bounds = array<i64: 1, 128>}, {transform_indices = @transform_7, window_bounds = array<i64: 128, 128>}]} {
    %c0_i32 = arith.constant 0 : i32
    %0 = arith.cmpi eq, %arg1, %c0_i32 : i32
    %1 = arith.extui %0 : i1 to i32
    %c0_i32_0 = arith.constant 0 : i32
    %2 = arith.cmpi ne, %1, %c0_i32_0 : i32
    scf.if %2 {
      %c0_18 = arith.constant 0 : index
      %c0_19 = arith.constant 0 : index
      %25 = vector.load %arg2[%c0_18, %c0_19] : memref<128x128xf32, #tpu.memory_space<vmem>>, vector<128x128xf32>
      %cst_20 = arith.constant dense<0.000000e+00> : vector<128xf32>
      %26 = vector.multi_reduction <add>, %25, %cst_20 [1] : vector<128x128xf32> to vector<128xf32>
      %27 = vector.shape_cast %26 : vector<128xf32> to vector<128x1xf32>
      %cst_21 = arith.constant 6.250000e-02 : f32
      %28 = vector.broadcast %cst_21 : f32 to vector<128x1xf32>
      %29 = arith.mulf %27, %28 : vector<128x1xf32>
      %30 = vector.broadcast %29 : vector<128x1xf32> to vector<128x128xf32>
      %31 = arith.subf %25, %30 : vector<128x128xf32>
      %32 = tpu.iota {dimensions = array<i32: 1>} : vector<1x128xi32>
      %c16_i32 = arith.constant 16 : i32
      %33 = vector.broadcast %c16_i32 : i32 to vector<1x128xi32>
      %34 = arith.cmpi slt, %32, %33 : vector<1x128xi32>
      %cst_22 = arith.constant 0.000000e+00 : f32
      %35 = vector.shape_cast %34 : vector<1x128xi1> to vector<1x128xi1>
      %36 = vector.broadcast %35 : vector<1x128xi1> to vector<128x128xi1>
      %37 = vector.broadcast %cst_22 : f32 to vector<128x128xf32>
      %38 = arith.select %36, %31, %37 : vector<128x128xi1>, vector<128x128xf32>
      %39 = arith.mulf %38, %38 : vector<128x128xf32>
      %cst_23 = arith.constant dense<0.000000e+00> : vector<128xf32>
      %40 = vector.multi_reduction <add>, %39, %cst_23 [1] : vector<128x128xf32> to vector<128xf32>
      %41 = vector.shape_cast %40 : vector<128xf32> to vector<128x1xf32>
      %cst_24 = arith.constant 6.250000e-02 : f32
      %42 = vector.broadcast %cst_24 : f32 to vector<128x1xf32>
      %43 = arith.mulf %41, %42 : vector<128x1xf32>
      %cst_25 = arith.constant 9.99999974E-6 : f32
      %44 = vector.broadcast %cst_25 : f32 to vector<128x1xf32>
      %45 = arith.addf %43, %44 : vector<128x1xf32>
      %46 = math.rsqrt %45 : vector<128x1xf32>
      %47 = vector.broadcast %46 : vector<128x1xf32> to vector<128x128xf32>
      %48 = arith.mulf %38, %47 : vector<128x128xf32>
      %c0_26 = arith.constant 0 : index
      %c0_27 = arith.constant 0 : index
      %49 = vector.load %arg3[%c0_26, %c0_27] : memref<1x128xf32, #tpu.memory_space<vmem>>, vector<1x128xf32>
      %50 = vector.broadcast %49 : vector<1x128xf32> to vector<128x128xf32>
      %51 = arith.mulf %48, %50 : vector<128x128xf32>
      %c0_28 = arith.constant 0 : index
      %c0_29 = arith.constant 0 : index
      %52 = vector.load %arg4[%c0_28, %c0_29] : memref<1x128xf32, #tpu.memory_space<vmem>>, vector<1x128xf32>
      %53 = vector.broadcast %52 : vector<1x128xf32> to vector<128x128xf32>
      %54 = arith.addf %51, %53 : vector<128x128xf32>
      %c0_30 = arith.constant 0 : index
      %c0_31 = arith.constant 0 : index
      %55 = vector.load %arg10[%c0_30, %c0_31] : memref<128x128xf32, #tpu.memory_space<vmem>>, vector<128x128xf32>
      tpu.vector_store %arg10[%c0_30, %c0_31], %54 {strides = array<i32>} : memref<128x128xf32, #tpu.memory_space<vmem>>, vector<128x128xf32>,
      %cst_32 = arith.constant 0.000000e+00 : f32
      %56 = vector.broadcast %cst_32 : f32 to vector<128x128xf32>
      %c0_33 = arith.constant 0 : index
      %c0_34 = arith.constant 0 : index
      %57 = vector.load %arg11[%c0_33, %c0_34] : memref<128x128xf32, #tpu.memory_space<vmem>>, vector<128x128xf32>
      tpu.vector_store %arg11[%c0_33, %c0_34], %56 {strides = array<i32>} : memref<128x128xf32, #tpu.memory_space<vmem>>, vector<128x128xf32>,
    } else {
    }
    %c0 = arith.constant 0 : index
    %c0_1 = arith.constant 0 : index
    %3 = vector.load %arg10[%c0, %c0_1] : memref<128x128xf32, #tpu.memory_space<vmem>>, vector<128x128xf32>
    %c0_2 = arith.constant 0 : index
    %c0_3 = arith.constant 0 : index
    %4 = vector.load %arg5[%c0_2, %c0_3] : memref<128x128xf32, #tpu.memory_space<vmem>>, vector<128x128xf32>
    %cst = arith.constant dense<0.000000e+00> : vector<128x128xf32>
    %5 = tpu.matmul %3, %4, %cst {dimension_numbers = #tpu.dot_dimension_numbers<[1], [0], [0], [1], [0, 0, 1, 1], [], []>} : vector<128x128xf32>, vector<128x128xf32>, vector<128x128xf32> -> vector<128x128xf32>
    %c0_4 = arith.constant 0 : index
    %c0_5 = arith.constant 0 : index
    %6 = vector.load %arg6[%c0_4, %c0_5] : memref<1x128xf32, #tpu.memory_space<vmem>>, vector<1x128xf32>
    %7 = vector.broadcast %6 : vector<1x128xf32> to vector<128x128xf32>
    %8 = arith.addf %5, %7 : vector<128x128xf32>
    %cst_6 = arith.constant 5.000000e-01 : f32
    %9 = vector.broadcast %cst_6 : f32 to vector<128x128xf32>
    %10 = arith.mulf %9, %8 : vector<128x128xf32>
    %cst_7 = arith.constant 0.707106769 : f32
    %11 = vector.broadcast %cst_7 : f32 to vector<128x128xf32>
    %12 = arith.mulf %8, %11 : vector<128x128xf32>
    %13 = math.erf %12 : vector<128x128xf32>
    %cst_8 = arith.constant 1.000000e+00 : f32
    %14 = vector.broadcast %cst_8 : f32 to vector<128x128xf32>
    %15 = arith.addf %14, %13 : vector<128x128xf32>
    %16 = arith.mulf %10, %15 : vector<128x128xf32>
    %c0_9 = arith.constant 0 : index
    %c0_10 = arith.constant 0 : index
    %17 = vector.load %arg11[%c0_9, %c0_10] : memref<128x128xf32, #tpu.memory_space<vmem>>, vector<128x128xf32>
    %c0_11 = arith.constant 0 : index
    %c0_12 = arith.constant 0 : index
    %18 = vector.load %arg7[%c0_11, %c0_12] : memref<128x128xf32, #tpu.memory_space<vmem>>, vector<128x128xf32>
    %cst_13 = arith.constant dense<0.000000e+00> : vector<128x128xf32>
    %19 = tpu.matmul %16, %18, %cst_13 {dimension_numbers = #tpu.dot_dimension_numbers<[1], [0], [0], [1], [0, 0, 1, 1], [], []>} : vector<128x128xf32>, vector<128x128xf32>, vector<128x128xf32> -> vector<128x128xf32>
    %20 = arith.addf %17, %19 : vector<128x128xf32>
    %c0_14 = arith.constant 0 : index
    %c0_15 = arith.constant 0 : index
    %21 = vector.load %arg11[%c0_14, %c0_15] : memref<128x128xf32, #tpu.memory_space<vmem>>, vector<128x128xf32>
    tpu.vector_store %arg11[%c0_14, %c0_15], %20 {strides = array<i32>} : memref<128x128xf32, #tpu.memory_space<vmem>>, vector<128x128xf32>,
    %c0_i32_16 = arith.constant 0 : i32
    %22 = arith.cmpi eq, %arg1, %c0_i32_16 : i32
    %23 = arith.extui %22 : i1 to i32
    %c0_i32_17 = arith.constant 0 : i32
    %24 = arith.cmpi ne, %23, %c0_i32_17 : i32
    scf.if %24 {
      %c0_18 = arith.constant 0 : index
      %c0_19 = arith.constant 0 : index
      %25 = vector.load %arg11[%c0_18, %c0_19] : memref<128x128xf32, #tpu.memory_space<vmem>>, vector<128x128xf32>
      %c0_20 = arith.constant 0 : index
      %c0_21 = arith.constant 0 : index
      %26 = vector.load %arg8[%c0_20, %c0_21] : memref<1x128xf32, #tpu.memory_space<vmem>>, vector<1x128xf32>
      %27 = vector.broadcast %26 : vector<1x128xf32> to vector<128x128xf32>
      %28 = arith.addf %25, %27 : vector<128x128xf32>
      %c0_22 = arith.constant 0 : index
      %c0_23 = arith.constant 0 : index
      %29 = vector.load %arg2[%c0_22, %c0_23] : memref<128x128xf32, #tpu.memory_space<vmem>>, vector<128x128xf32>
      %30 = arith.addf %28, %29 : vector<128x128xf32>
      %c0_24 = arith.constant 0 : index
      %c0_25 = arith.constant 0 : index
      %31 = vector.load %arg9[%c0_24, %c0_25] : memref<128x128xf32, #tpu.memory_space<vmem>>, vector<128x128xf32>
      tpu.vector_store %arg9[%c0_24, %c0_25], %30 {strides = array<i32>} : memref<128x128xf32, #tpu.memory_space<vmem>>, vector<128x128xf32>,
    } else {
    }
    return
  }
  func.func @transform_0(%arg0: i32, %arg1: i32) -> (i32, i32) {
    %c0_i32 = arith.constant 0 : i32
    %c0_i32_0 = arith.constant 0 : i32
    return %arg0, %c0_i32 : i32, i32
  }
  func.func @transform_1(%arg0: i32, %arg1: i32) -> (i32, i32) {
    %c0_i32 = arith.constant 0 : i32
    %c0_i32_0 = arith.constant 0 : i32
    %c0_i32_1 = arith.constant 0 : i32
    return %c0_i32, %c0_i32_0 : i32, i32
  }
  func.func @transform_2(%arg0: i32, %arg1: i32) -> (i32, i32) {
    %c0_i32 = arith.constant 0 : i32
    %c0_i32_0 = arith.constant 0 : i32
    %c0_i32_1 = arith.constant 0 : i32
    return %c0_i32, %c0_i32_0 : i32, i32
  }
  func.func @transform_3(%arg0: i32, %arg1: i32) -> (i32, i32) {
    %c0_i32 = arith.constant 0 : i32
    %c0_i32_0 = arith.constant 0 : i32
    return %c0_i32, %arg1 : i32, i32
  }
  func.func @transform_4(%arg0: i32, %arg1: i32) -> (i32, i32) {
    %c0_i32 = arith.constant 0 : i32
    %c0_i32_0 = arith.constant 0 : i32
    return %c0_i32, %arg1 : i32, i32
  }
  func.func @transform_5(%arg0: i32, %arg1: i32) -> (i32, i32) {
    %c0_i32 = arith.constant 0 : i32
    %c0_i32_0 = arith.constant 0 : i32
    return %arg1, %c0_i32 : i32, i32
  }
  func.func @transform_6(%arg0: i32, %arg1: i32) -> (i32, i32) {
    %c0_i32 = arith.constant 0 : i32
    %c0_i32_0 = arith.constant 0 : i32
    %c0_i32_1 = arith.constant 0 : i32
    return %c0_i32, %c0_i32_0 : i32, i32
  }
  func.func @transform_7(%arg0: i32, %arg1: i32) -> (i32, i32) {
    %c0_i32 = arith.constant 0 : i32
    %c0_i32_0 = arith.constant 0 : i32
    return %arg0, %c0_i32 : i32, i32
  }
}

</mosaic_0001>

<bundles_post_ra>
// kernel: tpu_custom_call.1
= control target key start
LH: loop header
LB: loop body
LE: loop exit
PB: predicated region body
PF: predicated region fallthrough
CT: control target
= control target key end

     0   :  { %12 = vsyncpa [#allocation5], 0  ;;  %s1626_s0 = inlined_call_operand.hbm [shape: f32[128,128], index: 0, kind: input, shape index: {}]   ;;  %s1627_s1 = inlined_call_operand.vmem [shape: f32[1,128], index: 1, kind: input, shape index: {}]   ;;  %s1628_s2 = inlined_call_operand.vmem [shape: f32[1,128], index: 2, kind: input, shape index: {}]   ;;  %s1629_s3 = inlined_call_operand.hbm [shape: f32[128,128], index: 3, kind: input, shape index: {}]   ;;  %s1630_s4 = inlined_call_operand.vmem [shape: f32[1,128], index: 4, kind: input, shape index: {}]   ;;  %s1631_s5 = inlined_call_operand.hbm [shape: f32[128,128], index: 5, kind: input, shape index: {}]   ;;  %s1632_s6 = inlined_call_operand.vmem [shape: f32[1,128], index: 6, kind: input, shape index: {}]   ;;  %s1633_s7 = inlined_call_operand.hbm [shape: f32[128,128], index: 7, kind: output, shape index: {}]  }
   0x1   :  { %13 = vsyncpa [#allocation8], 0 }
   0x2   :  { %14 = vsyncpa [#allocation6], 0  ;;  %s1289_s24 = smov [#allocation7]   ;;  %s1290_s26 = smov [#allocation4]  }
   0x3   :  { %s36_s25 = sshll.u32 %s1289_s24, 4  ;;  %s20_s27 = sshll.u32 %s1290_s26, 4  ;;  %s37_s25 = int_to_ptr.vmem [resolvable:$true] %s36_s25  ;;  %s21_s27 = int_to_ptr.vmem [resolvable:$true] %s20_s27 }
   0x4   :  { %s1211_s28 = scalar_lea.vmem %s37_s25, 2048  ;;  %p1216_p1 = scmp.lt.s32.totalorder %s37_s25, %s37_s25 }
   0x5   :  { %p1212_p0 = scmp.ne.s32.totalorder %s37_s25, %s1211_s28  ;;  %p1217_p2 = scmp.lt.s32.totalorder %s1211_s28, %s1211_s28 }
   0x7   :  { %p1218_p3 = por %p1217_p2, %p1216_p1 }
   0x9   :  { %p1219_p4 = pnand %p1218_p3, %p1212_p0 }
   0xb   :  { %1222 = shalt.err (!%p1219_p4)
}
   0xc   :  { %s1291_s29 = smov 128   ;;  %s1292_s30 = smov 8  }
   0xd   :  { %42 = dma.hbm_to_vmem [thread:$0]  %s1629_s3, 2048, %s37_s25, [#allocation8], %s1291_s29, %s1291_s29, %s1292_s30  }
   0xe   :  { %s1231_s10 = scalar_lea.vmem %s21_s27, 2048  ;;  %p1236_p6 = scmp.lt.s32.totalorder %s21_s27, %s21_s27 }
   0xf   :  { %p1232_p5 = scmp.ne.s32.totalorder %s21_s27, %s1231_s10  ;;  %p1237_p7 = scmp.lt.s32.totalorder %s1231_s10, %s1231_s10 }
  0x11   :  { %p1238_p8 = por %p1237_p7, %p1236_p6 }
  0x13   :  { %p1239_p9 = pnand %p1238_p8, %p1232_p5 }
  0x15   :  { %1242 = shalt.err (!%p1239_p9)
}
  0x16   :  { %26 = dma.hbm_to_vmem [thread:$0]  %s1626_s0, 2048, %s21_s27, [#allocation5], %s1291_s29, %s1291_s29, %s1292_s30  }
  0x17   :  { %s1293_s13 = smov [#allocation9]  }
  0x18   :  { %s50_s14 = sshll.u32 %s1293_s13, 4  ;;  %s51_s14 = int_to_ptr.vmem [resolvable:$true] %s50_s14 }
  0x19   :  { %s1251_s15 = scalar_lea.vmem %s51_s14, 2048  ;;  %p1256_p11 = scmp.lt.s32.totalorder %s51_s14, %s51_s14 }
  0x1a   :  { %p1252_p10 = scmp.ne.s32.totalorder %s51_s14, %s1251_s15  ;;  %p1257_p12 = scmp.lt.s32.totalorder %s1251_s15, %s1251_s15 }
  0x1c   :  { %p1258_p13 = por %p1257_p12, %p1256_p11 }
  0x1e   :  { %p1259_p0 = pnand %p1258_p13, %p1252_p10 }
  0x20   :  { %1262 = shalt.err (!%p1259_p0)
}
  0x21   :  { %56 = dma.hbm_to_vmem [thread:$0]  %s1631_s5, 2048, %s51_s14, [#allocation8], %s1291_s29, %s1291_s29, %s1292_s30  }
  0x22   :  { %1283 = dma.done.wait [#allocation5], 2048  }
  0x23   :  { %1284 = vsyncadd [#allocation5], 4294965248 }
  0x24   :  { %1285 = dma.done.wait [#allocation8], 4096  }
  0x25   :  { %1286 = vsyncadd [#allocation8], 4294963200  ;;  %v72_v0 = vld [vmem:[#allocation4] sm:$0xff]  ;;  %v74_v1 = vld [vmem:[#allocation4 + $0x10] sm:$0xff]  ;;  %v152_v18 = vlaneseq }
  0x26   :  { %88 = vadd.xlane.f32.xlu0 %v72_v0  ;;  %92 = vadd.xlane.f32.xlu1 %v74_v1  ;;  %v73_v2 = vld [vmem:[#allocation4 + $0x8] sm:$0xff]  ;;  %v75_v3 = vld [vmem:[#allocation4 + $0x18] sm:$0xff]  ;;  %v1353_v4 = vld [vmem:[#allocation4 + $0x20] sm:$0xff] }
  0x27   :  { %v1355_v5 = vld [vmem:[#allocation4 + $0x28] sm:$0xff]  ;;  %v1359_v6 = vld [vmem:[#allocation4 + $0x30] sm:$0xff]  ;;  %v1361_v7 = vld [vmem:[#allocation4 + $0x38] sm:$0xff]  ;;  %v1389_v19 = vand.u32 127, %v152_v18 }
  0x28   :  { %v1365_v8 = vld [vmem:[#allocation4 + $0x40] sm:$0xff]  ;;  %v1367_v9 = vld [vmem:[#allocation4 + $0x48] sm:$0xff]  ;;  %v1371_v10 = vld [vmem:[#allocation4 + $0x50] sm:$0xff] }
  0x29   :  { %v1373_v11 = vld [vmem:[#allocation4 + $0x58] sm:$0xff]  ;;  %v1377_v12 = vld [vmem:[#allocation4 + $0x60] sm:$0xff]  ;;  %v1379_v13 = vld [vmem:[#allocation4 + $0x68] sm:$0xff]  ;;  %vm154_vm0 = vcmp.lt.s32.totalorder %v1389_v19, 16 }
  0x2a   :  { %90 = vadd.xlane.f32.xlu0 %v73_v2  ;;  %94 = vadd.xlane.f32.xlu1 %v75_v3  ;;  %v1383_v14 = vld [vmem:[#allocation4 + $0x70] sm:$0xff]  ;;  %v1385_v15 = vld [vmem:[#allocation4 + $0x78] sm:$0xff]  ;;  %v392_v62 = vld [vmem:[#allocation7 + $0x68] sm:$0xff] }
  0x2b   :  { %v394_v16 = vld [vmem:[#allocation7 + $0x78] sm:$0xff]  ;;  %v393_v17 = vld [vmem:[#allocation7 + $0x70] sm:$0xff] }
  0x2c   :  { %1012 = vmatprep.subr.mxu0 %v394_v16  ;;  %v382_v19 = vld [vmem:[#allocation7 + $0x18] sm:$0xff] }
  0x2d   :  { %1013 = vmatpush3.msra.mxu0 %v394_v16 }
  0x2e   :  { %96 = vadd.xlane.f32.xlu0 %v1353_v4  ;;  %98 = vadd.xlane.f32.xlu1 %v1355_v5 }
  0x2f   :  { %1014 = vmatprep.subr.mxu0 %v393_v17 }
  0x30   :  { %1015 = vmatpush3.msra.mxu0 %v393_v17  ;;  %v390_v17 = vld [vmem:[#allocation7 + $0x58] sm:$0xff] }
  0x31   :  { %1016 = vmatprep.subr.mxu0 %v392_v62 }
  0x32   :  { %100 = vadd.xlane.f32.xlu0 %v1359_v6  ;;  %102 = vadd.xlane.f32.xlu1 %v1361_v7 }
  0x33   :  { %1017 = vmatpush3.msra.mxu0 %v392_v62 }
  0x36   :  { %104 = vadd.xlane.f32.xlu0 %v1365_v8  ;;  %106 = vadd.xlane.f32.xlu1 %v1367_v9 }
  0x3a   :  { %108 = vadd.xlane.f32.xlu0 %v1371_v10  ;;  %110 = vadd.xlane.f32.xlu1 %v1373_v11 }
  0x3e   :  { %112 = vadd.xlane.f32.xlu0 %v1377_v12  ;;  %114 = vadd.xlane.f32.xlu1 %v1379_v13 }
  0x42   :  { %116 = vadd.xlane.f32.xlu0 %v1383_v14  ;;  %118 = vadd.xlane.f32.xlu1 %v1385_v15 }
  0xaf   :  { %v89_v20 = vpop.xlane.xlu0 %88  ;;  %v93_v21 = vpop.xlane.xlu1 %92 }
  0xb0   :  { %v120_v22 = vmul.f32 0.0625, %v89_v20  ;;  %v122_v23 = vmul.f32 0.0625, %v93_v21 }
  0xb2   :  { %v136_v24 = vsub.f32 %v72_v0, %v120_v22  ;;  %v138_v25 = vsub.f32 %v74_v1, %v122_v23 }
  0xb3   :  { %v91_v26 = vpop.xlane.xlu0 %90  ;;  %v95_v27 = vpop.xlane.xlu1 %94 }
  0xb4   :  { %v121_v28 = vmul.f32 0.0625, %v91_v26  ;;  %v123_v29 = vmul.f32 0.0625, %v95_v27  ;;  %v1394_v30 = vsel %vm154_vm0, %v136_v24, 0.0  ;;  %v1398_v31 = vsel %vm154_vm0, %v138_v25, 0.0  ;;  %v389_v24 = vld [vmem:[#allocation7 + $0x50] sm:$0xff] }
  0xb5   :  { %v173_v32 = vmul.f32 %v1394_v30, %v1394_v30  ;;  %v175_v37 = vmul.f32 %v1398_v31, %v1398_v31 }
  0xb6   :  { %v137_v33 = vsub.f32 %v73_v2, %v121_v28  ;;  %v139_v34 = vsub.f32 %v75_v3, %v123_v29  ;;  %v391_v2 = vld [vmem:[#allocation7 + $0x60] sm:$0xff]  ;;  %v388_v28 = vld [vmem:[#allocation7 + $0x48] sm:$0xff] }
  0xb7   :  { %189 = vadd.xlane.f32.xlu0 %v173_v32  ;;  %v97_v35 = vpop.xlane.xlu0 %96  ;;  %v99_v36 = vpop.xlane.xlu1 %98  ;;  %1018 = vmatprep.subr.mxu0 %v391_v2 }
  0xb8   :  { %v124_v38 = vmul.f32 0.0625, %v97_v35  ;;  %v125_v39 = vmul.f32 0.0625, %v99_v36  ;;  %v1406_v40 = vsel %vm154_vm0, %v137_v33, 0.0  ;;  %v1410_v41 = vsel %vm154_vm0, %v139_v34, 0.0  ;;  %1019 = vmatpush3.msra.mxu0 %v391_v2  ;;  %v387_v36 = vld [vmem:[#allocation7 + $0x40] sm:$0xff] }
  0xb9   :  { %v174_v42 = vmul.f32 %v1406_v40, %v1406_v40  ;;  %v176_v47 = vmul.f32 %v1410_v41, %v1410_v41  ;;  %1020 = vmatprep.subr.mxu0 %v390_v17 }
  0xba   :  { %v140_v43 = vsub.f32 %v1353_v4, %v124_v38  ;;  %v141_v44 = vsub.f32 %v1355_v5, %v125_v39  ;;  %1021 = vmatpush3.msra.mxu0 %v390_v17 }
  0xbb   :  { %193 = vadd.xlane.f32.xlu0 %v175_v37  ;;  %191 = vadd.xlane.f32.xlu1 %v174_v42  ;;  %v101_v45 = vpop.xlane.xlu0 %100  ;;  %v103_v46 = vpop.xlane.xlu1 %102 }
  0xbc   :  { %v126_v48 = vmul.f32 0.0625, %v101_v45  ;;  %v127_v49 = vmul.f32 0.0625, %v103_v46  ;;  %v1420_v50 = vsel %vm154_vm0, %v140_v43, 0.0  ;;  %v1424_v51 = vsel %vm154_vm0, %v141_v44, 0.0  ;;  %1022 = vmatprep.subr.mxu0 %v389_v24  ;;  %v386_v44 = vld [vmem:[#allocation7 + $0x38] sm:$0xff] }
  0xbd   :  { %v177_v52 = vmul.f32 %v1420_v50, %v1420_v50  ;;  %v178_v57 = vmul.f32 %v1424_v51, %v1424_v51  ;;  %1023 = vmatpush3.msra.mxu0 %v389_v24 }
  0xbe   :  { %v142_v53 = vsub.f32 %v1359_v6, %v126_v48  ;;  %v143_v54 = vsub.f32 %v1361_v7, %v127_v49  ;;  %1024 = vmatprep.subr.mxu0 %v388_v28  ;;  %v384_v49 = vld [vmem:[#allocation7 + $0x28] sm:$0xff] }
  0xbf   :  { %195 = vadd.xlane.f32.xlu1 %v176_v47  ;;  %197 = vadd.xlane.f32.xlu0 %v177_v52  ;;  %v105_v55 = vpop.xlane.xlu0 %104  ;;  %v107_v56 = vpop.xlane.xlu1 %106  ;;  %v383_v52 = vld [vmem:[#allocation7 + $0x20] sm:$0xff] }
  0xc0   :  { %v128_v58 = vmul.f32 0.0625, %v105_v55  ;;  %v129_v59 = vmul.f32 0.0625, %v107_v56  ;;  %v1434_v60 = vsel %vm154_vm0, %v142_v53, 0.0  ;;  %v1438_v61 = vsel %vm154_vm0, %v143_v54, 0.0  ;;  %1025 = vmatpush3.msra.mxu0 %v388_v28  ;;  %v381_v53 = vld [vmem:[#allocation7 + $0x10] sm:$0xff]  ;;  %v380_v54 = vld [vmem:[#allocation7 + $0x8] sm:$0xff] }
  0xc1   :  { %v179_v63 = vmul.f32 %v1434_v60, %v1434_v60  ;;  %v180_v5 = vmul.f32 %v1438_v61, %v1438_v61  ;;  %1026 = vmatprep.subr.mxu0 %v387_v36  ;;  %v379_v55 = vld [vmem:[#allocation7] sm:$0xff]  ;;  %v658_v56 = vld [vmem:[#allocation9 + $0x78] sm:$0xff] }
  0xc2   :  { %v144_v0 = vsub.f32 %v1365_v8, %v128_v58  ;;  %v145_v1 = vsub.f32 %v1367_v9, %v129_v59  ;;  %1027 = vmatpush3.msra.mxu0 %v387_v36  ;;  %1068 = vmatprep.subr.mxu1 %v658_v56  ;;  %v656_v58 = vld [vmem:[#allocation9 + $0x68] sm:$0xff] }
  0xc3   :  { %199 = vadd.xlane.f32.xlu1 %v178_v57  ;;  %201 = vadd.xlane.f32.xlu0 %v179_v63  ;;  %v109_v3 = vpop.xlane.xlu0 %108  ;;  %v111_v4 = vpop.xlane.xlu1 %110  ;;  %v657_v57 = vld [vmem:[#allocation9 + $0x70] sm:$0xff] }
  0xc4   :  { %v130_v6 = vmul.f32 0.0625, %v109_v3  ;;  %v131_v7 = vmul.f32 0.0625, %v111_v4  ;;  %v1448_v16 = vsel %vm154_vm0, %v144_v0, 0.0  ;;  %v1452_v8 = vsel %vm154_vm0, %v145_v1, 0.0  ;;  %1028 = vmatprep.subr.mxu0 %v386_v44  ;;  %1069 = vmatpush3.msra.mxu1 %v658_v56 }
  0xc5   :  { %v181_v9 = vmul.f32 %v1448_v16, %v1448_v16  ;;  %v182_v23 = vmul.f32 %v1452_v8, %v1452_v8  ;;  %1029 = vmatpush3.msra.mxu0 %v386_v44  ;;  %1070 = vmatprep.subr.mxu1 %v657_v57 }
  0xc6   :  { %v146_v18 = vsub.f32 %v1371_v10, %v130_v6  ;;  %v147_v20 = vsub.f32 %v1373_v11, %v131_v7  ;;  %1071 = vmatpush3.msra.mxu1 %v657_v57 }
  0xc7   :  { %203 = vadd.xlane.f32.xlu1 %v180_v5  ;;  %205 = vadd.xlane.f32.xlu0 %v181_v9  ;;  %v113_v21 = vpop.xlane.xlu0 %112  ;;  %v115_v22 = vpop.xlane.xlu1 %114 }
  0xc8   :  { %v132_v25 = vmul.f32 0.0625, %v113_v21  ;;  %v133_v26 = vmul.f32 0.0625, %v115_v22  ;;  %v1462_v27 = vsel %vm154_vm0, %v146_v18, 0.0  ;;  %v1466_v10 = vsel %vm154_vm0, %v147_v20, 0.0  ;;  %1072 = vmatprep.subr.mxu1 %v656_v58 }
  0xc9   :  { %v183_v11 = vmul.f32 %v1462_v27, %v1462_v27  ;;  %v184_v35 = vmul.f32 %v1466_v10, %v1466_v10  ;;  %1073 = vmatpush3.msra.mxu1 %v656_v58 }
  0xca   :  { %v148_v29 = vsub.f32 %v1377_v12, %v132_v25  ;;  %v149_v32 = vsub.f32 %v1379_v13, %v133_v26 }
  0xcb   :  { %207 = vadd.xlane.f32.xlu1 %v182_v23  ;;  %209 = vadd.xlane.f32.xlu0 %v183_v11  ;;  %v117_v33 = vpop.xlane.xlu0 %116  ;;  %v119_v34 = vpop.xlane.xlu1 %118 }
  0xcc   :  { %v134_v37 = vmul.f32 0.0625, %v117_v33  ;;  %v135_v38 = vmul.f32 0.0625, %v119_v34  ;;  %v1476_v39 = vsel %vm154_vm0, %v148_v29, 0.0  ;;  %v1480_v12 = vsel %vm154_vm0, %v149_v32, 0.0  ;;  %v1503_v34 = vld [vmem:[%s1627_s1] ss:$0 sm:$0xff] }
  0xcd   :  { %v185_v13 = vmul.f32 %v1476_v39, %v1476_v39  ;;  %v186_v45 = vmul.f32 %v1480_v12, %v1480_v12 }
  0xce   :  { %v150_v42 = vsub.f32 %v1383_v14, %v134_v37  ;;  %v151_v43 = vsub.f32 %v1385_v15, %v135_v38  ;;  %v385_v15 = vld [vmem:[#allocation7 + $0x30] sm:$0xff] }
  0xcf   :  { %211 = vadd.xlane.f32.xlu1 %v184_v35  ;;  %213 = vadd.xlane.f32.xlu0 %v185_v13 }
  0xd0   :  { %v1490_v46 = vsel %vm154_vm0, %v150_v42, 0.0  ;;  %v1494_v47 = vsel %vm154_vm0, %v151_v43, 0.0  ;;  %1030 = vmatprep.subr.mxu0 %v385_v15  ;;  %v1509_v42 = vld [vmem:[%s1628_s2] ss:$0 sm:$0xff] }
  0xd1   :  { %v187_v14 = vmul.f32 %v1490_v46, %v1490_v46  ;;  %v188_v48 = vmul.f32 %v1494_v47, %v1494_v47  ;;  %1031 = vmatpush3.msra.mxu0 %v385_v15 }
  0xd2   :  { %1032 = vmatprep.subr.mxu0 %v384_v49 }
  0xd3   :  { %215 = vadd.xlane.f32.xlu1 %v186_v45  ;;  %217 = vadd.xlane.f32.xlu0 %v187_v14 }
  0xd4   :  { %1033 = vmatpush3.msra.mxu0 %v384_v49 }
  0xd5   :  { %1034 = vmatprep.subr.mxu0 %v383_v52 }
  0xd6   :  { %1035 = vmatpush3.msra.mxu0 %v383_v52 }
  0xd7   :  { %219 = vadd.xlane.f32.xlu1 %v188_v48  ;;  %1036 = vmatprep.subr.mxu0 %v382_v19 }
  0xd8   :  { %1037 = vmatpush3.msra.mxu0 %v382_v19 }
  0xd9   :  { %1038 = vmatprep.subr.mxu0 %v381_v53 }
  0xda   :  { %1039 = vmatpush3.msra.mxu0 %v381_v53 }
  0xdb   :  { %1040 = vmatprep.subr.mxu0 %v380_v54 }
  0xdc   :  { %1041 = vmatpush3.msra.mxu0 %v380_v54 }
  0xdd   :  { %1042 = vmatprep.subr.mxu0 %v379_v55 }
  0xde   :  { %1043 = vmatpush3.msra.mxu0 %v379_v55 }
 0x140   :  { %v190_v59 = vpop.xlane.xlu0 %189 }
 0x141   :  { %v221_v62 = vmul.f32 0.0625, %v190_v59 }
 0x143   :  { %v237_v63 = vadd.f32 1e-05, %v221_v62 }
 0x144   :  { %v192_v0 = vpop.xlane.xlu1 %191  ;;  %v194_v1 = vpop.xlane.xlu0 %193 }
 0x145   :  { %1130 = vrsqrt.f32 %v237_v63  ;;  %v222_v2 = vmul.f32 0.0625, %v192_v0  ;;  %v223_v3 = vmul.f32 0.0625, %v194_v1 }
 0x147   :  { %v238_v4 = vadd.f32 1e-05, %v222_v2  ;;  %v239_v5 = vadd.f32 1e-05, %v223_v3 }
 0x148   :  { %v196_v6 = vpop.xlane.xlu1 %195  ;;  %v198_v7 = vpop.xlane.xlu0 %197 }
 0x149   :  { %1132 = vrsqrt.f32 %v238_v4  ;;  %v224_v9 = vmul.f32 0.0625, %v196_v6  ;;  %v225_v17 = vmul.f32 0.0625, %v198_v7 }
 0x14a   :  { %1134 = vrsqrt.f32 %v239_v5 }
 0x14b   :  { %v240_v18 = vadd.f32 1e-05, %v224_v9  ;;  %v241_v20 = vadd.f32 1e-05, %v225_v17 }
 0x14c   :  { %v200_v21 = vpop.xlane.xlu1 %199  ;;  %v202_v22 = vpop.xlane.xlu0 %201 }
 0x14d   :  { %1136 = vrsqrt.f32 %v240_v18  ;;  %v226_v23 = vmul.f32 0.0625, %v200_v21  ;;  %v227_v24 = vmul.f32 0.0625, %v202_v22 }
 0x14e   :  { %1138 = vrsqrt.f32 %v241_v20 }
 0x14f   :  { %v242_v25 = vadd.f32 1e-05, %v226_v23  ;;  %v243_v26 = vadd.f32 1e-05, %v227_v24 }
 0x150   :  { %v204_v11 = vpop.xlane.xlu1 %203  ;;  %v206_v28 = vpop.xlane.xlu0 %205 }
 0x151   :  { %1140 = vrsqrt.f32 %v242_v25  ;;  %v228_v29 = vmul.f32 0.0625, %v204_v11  ;;  %v229_v32 = vmul.f32 0.0625, %v206_v28 }
 0x152   :  { %v1131_v33 = vpop.eup %1130  ;;  %1142 = vrsqrt.f32 %v243_v26 }
 0x153   :  { %v244_v35 = vadd.f32 1e-05, %v228_v29  ;;  %v245_v36 = vadd.f32 1e-05, %v229_v32  ;;  %v269_v37 = vmul.f32 %v1131_v33, %v1394_v30 }
 0x154   :  { %v208_v38 = vpop.xlane.xlu1 %207  ;;  %v210_v13 = vpop.xlane.xlu0 %209 }
 0x155   :  { %1144 = vrsqrt.f32 %v244_v35  ;;  %v230_v43 = vmul.f32 0.0625, %v208_v38  ;;  %v231_v44 = vmul.f32 0.0625, %v210_v13  ;;  %v292_v45 = vmul.f32 %v1503_v34, %v269_v37 }
 0x156   :  { %v1133_v14 = vpop.eup %1132  ;;  %1146 = vrsqrt.f32 %v245_v36 }
 0x157   :  { %v1135_v15 = vpop.eup %1134  ;;  %v246_v48 = vadd.f32 1e-05, %v230_v43  ;;  %v247_v49 = vadd.f32 1e-05, %v231_v44  ;;  %v315_v52 = vadd.f32 %v1509_v42, %v292_v45  ;;  %v270_v30 = vmul.f32 %v1133_v14, %v1406_v40 }
 0x158   :  { %v212_v19 = vpop.xlane.xlu1 %211  ;;  %v214_v53 = vpop.xlane.xlu0 %213  ;;  %v271_v54 = vmul.f32 %v1135_v15, %v1398_v31 }
 0x159   :  { %1148 = vrsqrt.f32 %v246_v48  ;;  %v232_v55 = vmul.f32 0.0625, %v212_v19  ;;  %v233_v56 = vmul.f32 0.0625, %v214_v53  ;;  %1044 = vmatprep.mubr.f32.mxu0 %v315_v52  ;;  %v293_v57 = vmul.f32 %v1503_v34, %v270_v30 }
 0x15a   :  { %v1137_v58 = vpop.eup %1136  ;;  %1150 = vrsqrt.f32 %v247_v49  ;;  %v294_v59 = vmul.f32 %v1503_v34, %v271_v54 }
 0x15b   :  { %v1139_v62 = vpop.eup %1138  ;;  %v248_v63 = vadd.f32 1e-05, %v232_v55  ;;  %v249_v0 = vadd.f32 1e-05, %v233_v56  ;;  %v316_v1 = vadd.f32 %v1509_v42, %v293_v57  ;;  %v272_v40 = vmul.f32 %v1137_v58, %v1410_v41 }
 0x15c   :  { %v216_v2 = vpop.xlane.xlu1 %215  ;;  %v218_v3 = vpop.xlane.xlu0 %217  ;;  %v317_v31 = vadd.f32 %v1509_v42, %v294_v59  ;;  %v273_v4 = vmul.f32 %v1139_v62, %v1420_v50 }
 0x15d   :  { %1152 = vrsqrt.f32 %v248_v63  ;;  %v234_v5 = vmul.f32 0.0625, %v216_v2  ;;  %v235_v6 = vmul.f32 0.0625, %v218_v3  ;;  %1045 = vmatmul.mubr.f32.vlgmr.msra.gmra.mxu0 %v316_v1  ;;  %v295_v7 = vmul.f32 %v1503_v34, %v272_v40  ;;  %v654_v40 = vld [vmem:[#allocation9 + $0x58] sm:$0xff]  ;;  %v653_v2 = vld [vmem:[#allocation9 + $0x50] sm:$0xff]  ;;  %v652_v3 = vld [vmem:[#allocation9 + $0x48] sm:$0xff] }
 0x15e   :  { %v1141_v9 = vpop.eup %1140  ;;  %1154 = vrsqrt.f32 %v249_v0  ;;  %1047 = vmatprep.mubr.f32.mxu0 %v317_v31  ;;  %v296_v17 = vmul.f32 %v1503_v34, %v273_v4  ;;  %v648_v31 = vld [vmem:[#allocation9 + $0x28] sm:$0xff]  ;;  %v647_v4 = vld [vmem:[#allocation9 + $0x20] sm:$0xff] }
 0x15f   :  { %v1143_v18 = vpop.eup %1142  ;;  %v250_v20 = vadd.f32 1e-05, %v234_v5  ;;  %v251_v41 = vadd.f32 1e-05, %v235_v6  ;;  %v318_v21 = vadd.f32 %v1509_v42, %v295_v7  ;;  %v274_v22 = vmul.f32 %v1141_v9, %v1424_v51  ;;  %v646_v5 = vld [vmem:[#allocation9 + $0x18] sm:$0xff]  ;;  %v645_v6 = vld [vmem:[#allocation9 + $0x10] sm:$0xff] }
 0x160   :  { %v220_v23 = vpop.xlane.xlu1 %219  ;;  %v319_v50 = vadd.f32 %v1509_v42, %v296_v17  ;;  %v275_v24 = vmul.f32 %v1143_v18, %v1434_v60  ;;  %v644_v7 = vld [vmem:[#allocation9 + $0x8] sm:$0xff]  ;;  %v643_v9 = vld [vmem:[#allocation9] sm:$0xff] }
 0x161   :  { %1156 = vrsqrt.f32 %v250_v20  ;;  %v236_v25 = vmul.f32 0.0625, %v220_v23  ;;  %1048 = vmatmul.mubr.f32.gmra.mxu0 %v318_v21  ;;  %v297_v26 = vmul.f32 %v1503_v34, %v274_v22  ;;  %v1561_v17 = vld [vmem:[%s1630_s4] ss:$0 sm:$0xff] }
 0x162   :  { %v1145_v11 = vpop.eup %1144  ;;  %1158 = vrsqrt.f32 %v251_v41  ;;  %1050 = vmatprep.mubr.f32.mxu0 %v319_v50  ;;  %v298_v28 = vmul.f32 %v1503_v34, %v275_v24 }
 0x163   :  { %v1147_v29 = vpop.eup %1146  ;;  %v252_v32 = vadd.f32 1e-05, %v236_v25  ;;  %v320_v33 = vadd.f32 %v1509_v42, %v297_v26  ;;  %v276_v51 = vmul.f32 %v1145_v11, %v1438_v61 }
 0x164   :  { %v321_v35 = vadd.f32 %v1509_v42, %v298_v28  ;;  %v277_v60 = vmul.f32 %v1147_v29, %v1448_v16 }
 0x165   :  { %1160 = vrsqrt.f32 %v252_v32  ;;  %1051 = vmatmul.mubr.f32.gmra.mxu0 %v320_v33  ;;  %v299_v36 = vmul.f32 %v1503_v34, %v276_v51 }
 0x166   :  { %v1149_v37 = vpop.eup %1148  ;;  %1053 = vmatprep.mubr.f32.mxu0 %v321_v35  ;;  %v300_v38 = vmul.f32 %v1503_v34, %v277_v60 }
 0x167   :  { %v1151_v13 = vpop.eup %1150  ;;  %v322_v43 = vadd.f32 %v1509_v42, %v299_v36  ;;  %v278_v44 = vmul.f32 %v1149_v37, %v1452_v8 }
 0x168   :  { %v323_v45 = vadd.f32 %v1509_v42, %v300_v38  ;;  %v279_v61 = vmul.f32 %v1151_v13, %v1462_v27 }
 0x169   :  { %1054 = vmatmul.mubr.f32.gmra.mxu0 %v322_v43  ;;  %v301_v16 = vmul.f32 %v1503_v34, %v278_v44 }
 0x16a   :  { %v1153_v14 = vpop.eup %1152  ;;  %1056 = vmatprep.mubr.f32.mxu0 %v323_v45  ;;  %v302_v15 = vmul.f32 %v1503_v34, %v279_v61 }
 0x16b   :  { %v1155_v48 = vpop.eup %1154  ;;  %v324_v49 = vadd.f32 %v1509_v42, %v301_v16  ;;  %v280_v52 = vmul.f32 %v1153_v14, %v1466_v10 }
 0x16c   :  { %v325_v30 = vadd.f32 %v1509_v42, %v302_v15  ;;  %v281_v8 = vmul.f32 %v1155_v48, %v1476_v39 }
 0x16d   :  { %1057 = vmatmul.mubr.f32.gmra.mxu0 %v324_v49  ;;  %v303_v19 = vmul.f32 %v1503_v34, %v280_v52 }
 0x16e   :  { %v1157_v27 = vpop.eup %1156  ;;  %1059 = vmatprep.mubr.f32.mxu0 %v325_v30  ;;  %v304_v53 = vmul.f32 %v1503_v34, %v281_v8 }
 0x16f   :  { %v1159_v54 = vpop.eup %1158  ;;  %v326_v55 = vadd.f32 %v1509_v42, %v303_v19  ;;  %v282_v56 = vmul.f32 %v1157_v27, %v1480_v12 }
 0x170   :  { %v327_v57 = vadd.f32 %v1509_v42, %v304_v53  ;;  %v283_v10 = vmul.f32 %v1159_v54, %v1490_v46  ;;  %v655_v46 = vld [vmem:[#allocation9 + $0x60] sm:$0xff] }
 0x171   :  { %1060 = vmatmul.mubr.f32.gmra.mxu0 %v326_v55  ;;  %v305_v58 = vmul.f32 %v1503_v34, %v282_v56  ;;  %1074 = vmatprep.subr.mxu1 %v655_v46 }
 0x172   :  { %v1161_v39 = vpop.eup %1160  ;;  %1062 = vmatprep.mubr.f32.mxu0 %v327_v57  ;;  %v306_v59 = vmul.f32 %v1503_v34, %v283_v10  ;;  %1075 = vmatpush3.msra.mxu1 %v655_v46 }
 0x173   :  { %v328_v62 = vadd.f32 %v1509_v42, %v305_v58  ;;  %v284_v63 = vmul.f32 %v1161_v39, %v1494_v47  ;;  %1076 = vmatprep.subr.mxu1 %v654_v40  ;;  %v651_v47 = vld [vmem:[#allocation9 + $0x40] sm:$0xff] }
 0x174   :  { %v329_v0 = vadd.f32 %v1509_v42, %v306_v59  ;;  %1077 = vmatpush3.msra.mxu1 %v654_v40 }
 0x175   :  { %1063 = vmatmul.mubr.f32.gmra.mxu0 %v328_v62  ;;  %v307_v12 = vmul.f32 %v1503_v34, %v284_v63  ;;  %1078 = vmatprep.subr.mxu1 %v653_v2  ;;  %v650_v34 = vld [vmem:[#allocation9 + $0x38] sm:$0xff] }
 0x176   :  { %1065 = vmatprep.mubr.f32.mxu0 %v329_v0  ;;  %1079 = vmatpush3.msra.mxu1 %v653_v2 }
 0x177   :  { %v330_v1 = vadd.f32 %v1509_v42, %v307_v12  ;;  %1080 = vmatprep.subr.mxu1 %v652_v3  ;;  %v649_v42 = vld [vmem:[#allocation9 + $0x30] sm:$0xff] }
 0x178   :  { %1081 = vmatpush3.msra.mxu1 %v652_v3 }
 0x179   :  { %1066 = vmatmul.mubr.f32.gmra.mxu0 %v330_v1  ;;  %1082 = vmatprep.subr.mxu1 %v651_v47 }
 0x17a   :  { %1083 = vmatpush3.msra.mxu1 %v651_v47 }
 0x17b   :  { %1084 = vmatprep.subr.mxu1 %v650_v34 }
 0x17c   :  { %1085 = vmatpush3.msra.mxu1 %v650_v34 }
 0x17d   :  { %1086 = vmatprep.subr.mxu1 %v649_v42 }
 0x17e   :  { %1087 = vmatpush3.msra.mxu1 %v649_v42 }
 0x17f   :  { %1088 = vmatprep.subr.mxu1 %v648_v31 }
 0x180   :  { %1089 = vmatpush3.msra.mxu1 %v648_v31 }
 0x181   :  { %1090 = vmatprep.subr.mxu1 %v647_v4 }
 0x182   :  { %1091 = vmatpush3.msra.mxu1 %v647_v4 }
 0x183   :  { %1092 = vmatprep.subr.mxu1 %v646_v5 }
 0x184   :  { %1093 = vmatpush3.msra.mxu1 %v646_v5 }
 0x185   :  { %1094 = vmatprep.subr.mxu1 %v645_v6 }
 0x186   :  { %1095 = vmatpush3.msra.mxu1 %v645_v6 }
 0x187   :  { %1096 = vmatprep.subr.mxu1 %v644_v7 }
 0x188   :  { %1097 = vmatpush3.msra.mxu1 %v644_v7 }
 0x189   :  { %1098 = vmatprep.subr.mxu1 %v643_v9 }
 0x18a   :  { %1099 = vmatpush3.msra.mxu1 %v643_v9 }
 0x21d   :  { %v1046_v18 = vpop.f32.mrf.mxu0 }
 0x21e   :  { %v474_v20 = vadd.f32 %v1046_v18, %v1561_v17 }
 0x21f   :  { %v468_v41 = vpop.f32.mrf.mxu0 }
 0x220   :  { %v564_v21 = vmul.f32 0.70710677, %v474_v20  ;;  %v469_v22 = vadd.f32 %v1561_v17, %v468_v41  ;;  %v548_v53 = vmul.f32 0.5, %v474_v20 }
 0x221   :  { %v1049_v23 = vpop.f32.mrf.mxu0 }
 0x222   :  { %1162 = verf.f32 %v564_v21  ;;  %v563_v50 = vmul.f32 0.70710677, %v469_v22  ;;  %v484_v24 = vadd.f32 %v1049_v23, %v1561_v17  ;;  %v547_v55 = vmul.f32 0.5, %v469_v22 }
 0x223   :  { %v478_v25 = vpop.f32.mrf.mxu0 }
 0x224   :  { %1164 = verf.f32 %v563_v50  ;;  %v566_v26 = vmul.f32 0.70710677, %v484_v24  ;;  %v479_v11 = vadd.f32 %v1561_v17, %v478_v25  ;;  %v550_v3 = vmul.f32 0.5, %v484_v24 }
 0x225   :  { %v1052_v28 = vpop.f32.mrf.mxu0 }
 0x226   :  { %1166 = verf.f32 %v566_v26  ;;  %v565_v29 = vmul.f32 0.70710677, %v479_v11  ;;  %v494_v32 = vadd.f32 %v1052_v28, %v1561_v17  ;;  %v549_v46 = vmul.f32 0.5, %v479_v11 }
 0x227   :  { %v488_v33 = vpop.f32.mrf.mxu0 }
 0x228   :  { %1168 = verf.f32 %v565_v29  ;;  %v568_v51 = vmul.f32 0.70710677, %v494_v32  ;;  %v489_v35 = vadd.f32 %v1561_v17, %v488_v33  ;;  %v552_v20 = vmul.f32 0.5, %v494_v32 }
 0x229   :  { %v1055_v60 = vpop.f32.mrf.mxu0 }
 0x22a   :  { %1170 = verf.f32 %v568_v51  ;;  %v567_v36 = vmul.f32 0.70710677, %v489_v35  ;;  %v1570_v37 = vadd.f32 %v1055_v60, %v1561_v17  ;;  %v551_v41 = vmul.f32 0.5, %v489_v35 }
 0x22b   :  { %v498_v38 = vpop.f32.mrf.mxu0 }
 0x22c   :  { %1172 = verf.f32 %v567_v36  ;;  %v570_v13 = vmul.f32 0.70710677, %v1570_v37  ;;  %v499_v43 = vadd.f32 %v1561_v17, %v498_v38  ;;  %v554_v32 = vmul.f32 0.5, %v1570_v37 }
 0x22d   :  { %v1058_v44 = vpop.f32.mrf.mxu0 }
 0x22e   :  { %1174 = verf.f32 %v570_v13  ;;  %v569_v45 = vmul.f32 0.70710677, %v499_v43  ;;  %v1575_v61 = vadd.f32 %v1058_v44, %v1561_v17  ;;  %v553_v25 = vmul.f32 0.5, %v499_v43 }
 0x22f   :  { %v1163_v16 = vpop.eup %1162  ;;  %v508_v14 = vpop.f32.mrf.mxu0 }
 0x230   :  { %1176 = verf.f32 %v569_v45  ;;  %v572_v15 = vmul.f32 0.70710677, %v1575_v61  ;;  %v1579_v48 = vadd.f32 %v1561_v17, %v508_v14  ;;  %v596_v30 = vadd.f32 1.0, %v1163_v16 }
 0x231   :  { %v1165_v49 = vpop.eup %1164  ;;  %v1061_v52 = vpop.f32.mrf.mxu0  ;;  %v556_v44 = vmul.f32 0.5, %v1575_v61 }
 0x232   :  { %1178 = verf.f32 %v572_v15  ;;  %v571_v8 = vmul.f32 0.70710677, %v1579_v48  ;;  %v1583_v19 = vadd.f32 %v1061_v52, %v1561_v17  ;;  %v595_v56 = vadd.f32 1.0, %v1165_v49 }
 0x233   :  { %v1167_v27 = vpop.eup %1166  ;;  %v518_v54 = vpop.f32.mrf.mxu0  ;;  %v612_v62 = vmul.f32 %v596_v30, %v548_v53  ;;  %v555_v36 = vmul.f32 0.5, %v1579_v48 }
 0x234   :  { %1180 = verf.f32 %v571_v8  ;;  %v574_v57 = vmul.f32 0.70710677, %v1583_v19  ;;  %v519_v10 = vadd.f32 %v1561_v17, %v518_v54  ;;  %v611_v59 = vmul.f32 %v595_v56, %v547_v55 }
 0x235   :  { %v1169_v58 = vpop.eup %1168  ;;  %v1064_v39 = vpop.f32.mrf.mxu0  ;;  %v598_v12 = vadd.f32 1.0, %v1167_v27  ;;  %v558_v30 = vmul.f32 0.5, %v1583_v19 }
 0x236   :  { %1182 = verf.f32 %v574_v57  ;;  %v573_v63 = vmul.f32 0.70710677, %v519_v10  ;;  %v1588_v0 = vadd.f32 %v1064_v39, %v1561_v17  ;;  %1100 = vmatprep.mubr.f32.mxu1 %v611_v59  ;;  %v597_v2 = vadd.f32 1.0, %v1169_v58 }
 0x237   :  { %v1171_v1 = vpop.eup %1170  ;;  %v528_v40 = vpop.f32.mrf.mxu0  ;;  %1101 = vmatmul.mubr.f32.vlgmr.msra.gmra.mxu1 %v612_v62  ;;  %v614_v9 = vmul.f32 %v598_v12, %v550_v3  ;;  %v557_v14 = vmul.f32 0.5, %v519_v10 }
 0x238   :  { %1184 = verf.f32 %v573_v63  ;;  %v576_v47 = vmul.f32 0.70710677, %v1588_v0  ;;  %v529_v34 = vadd.f32 %v1561_v17, %v528_v40  ;;  %v613_v4 = vmul.f32 %v597_v2, %v549_v46  ;;  %v1194_v2 = vld [vmem:[#allocation4 + $0x8] sm:$0xff] }
 0x239   :  { %v1173_v42 = vpop.eup %1172  ;;  %v1067_v31 = vpop.f32.mrf.mxu0  ;;  %v600_v5 = vadd.f32 1.0, %v1171_v1  ;;  %v560_v56 = vmul.f32 0.5, %v1588_v0  ;;  %v1602_v1 = vld [vmem:[%s1632_s6] ss:$0 sm:$0xff]  ;;  %s1294_s6 = smov [#allocation10]  }
 0x23a   :  { %1186 = verf.f32 %v576_v47  ;;  %v575_v6 = vmul.f32 0.70710677, %v529_v34  ;;  %v544_v7 = vadd.f32 %v1067_v31, %v1561_v17  ;;  %1103 = vmatprep.mubr.f32.mxu1 %v613_v4  ;;  %v599_v22 = vadd.f32 1.0, %v1173_v42  ;;  %v1195_v42 = vld [vmem:[#allocation4] sm:$0xff]  ;;  %s931_s20 = sshll.u32 %s1294_s6, 4  ;;  %s932_s20 = int_to_ptr.vmem [resolvable:$true] %s931_s20 }
 0x23b   :  { %v1175_v18 = vpop.eup %1174  ;;  %v538_v21 = vpop.f32.mrf.mxu0  ;;  %1104 = vmatmul.mubr.f32.gmra.mxu1 %v614_v9  ;;  %v616_v11 = vmul.f32 %v600_v5, %v552_v20  ;;  %v559_v27 = vmul.f32 0.5, %v529_v34  ;;  %v1197_v20 = vld [vmem:[#allocation4 + $0x10] sm:$0xff]  ;;  %s1263_s21 = scalar_lea.vmem %s932_s20, 2048  ;;  %p1268_p2 = scmp.lt.s32.totalorder %s932_s20, %s932_s20 }
 0x23c   :  { %1188 = verf.f32 %v575_v6  ;;  %v578_v23 = vmul.f32 0.70710677, %v544_v7  ;;  %v539_v50 = vadd.f32 %v1561_v17, %v538_v21  ;;  %v615_v26 = vmul.f32 %v599_v22, %v551_v41  ;;  %v1196_v6 = vld [vmem:[#allocation4 + $0x18] sm:$0xff]  ;;  %p1264_p1 = scmp.ne.s32.totalorder %s932_s20, %s1263_s21  ;;  %p1269_p3 = scmp.lt.s32.totalorder %s1263_s21, %s1263_s21 }
 0x23d   :  { %v1177_v24 = vpop.eup %1176  ;;  %v602_v33 = vadd.f32 1.0, %v1175_v18  ;;  %v562_v19 = vmul.f32 0.5, %v544_v7 }
 0x23e   :  { %1190 = verf.f32 %v578_v23  ;;  %v577_v28 = vmul.f32 0.70710677, %v539_v50  ;;  %v601_v29 = vadd.f32 1.0, %v1177_v24  ;;  %1106 = vmatprep.mubr.f32.mxu1 %v615_v26  ;;  %v561_v58 = vmul.f32 0.5, %v539_v50  ;;  %v1198_v23 = vld [vmem:[#allocation4 + $0x28] sm:$0xff]  ;;  %v1199_v26 = vld [vmem:[#allocation4 + $0x20] sm:$0xff]  ;;  %p1270_p4 = por %p1269_p3, %p1268_p2 }
 0x23f   :  { %v1179_v51 = vpop.eup %1178  ;;  %1107 = vmatmul.mubr.f32.gmra.mxu1 %v616_v11  ;;  %v618_v17 = vmul.f32 %v602_v33, %v554_v32  ;;  %v1200_v33 = vld [vmem:[#allocation4 + $0x38] sm:$0xff] }
 0x240   :  { %1192 = verf.f32 %v577_v28  ;;  %v617_v35 = vmul.f32 %v601_v29, %v553_v25  ;;  %v604_v13 = vadd.f32 1.0, %v1179_v51  ;;  %p1271_p5 = pnand %p1270_p4, %p1264_p1 }
 0x241   :  { %v1181_v60 = vpop.eup %1180 }
 0x242   :  { %1109 = vmatprep.mubr.f32.mxu1 %v617_v35  ;;  %v603_v38 = vadd.f32 1.0, %v1181_v60  ;;  %v620_v15 = vmul.f32 %v604_v13, %v556_v44  ;;  %v1201_v60 = vld [vmem:[#allocation4 + $0x30] sm:$0xff]  ;;  %v886_v13 = vld [vmem:[#allocation4 + $0x40] sm:$0xff] }
 0x243   :  { %v1183_v43 = vpop.eup %1182  ;;  %1110 = vmatmul.mubr.f32.gmra.mxu1 %v618_v17 }
 0x244   :  { %v619_v45 = vmul.f32 %v603_v38, %v555_v36  ;;  %v606_v49 = vadd.f32 1.0, %v1183_v43  ;;  %v1202_v43 = vld [vmem:[#allocation4 + $0x48] sm:$0xff] }
 0x245   :  { %v1185_v16 = vpop.eup %1184 }
 0x246   :  { %1112 = vmatprep.mubr.f32.mxu1 %v619_v45  ;;  %v605_v37 = vadd.f32 1.0, %v1185_v16  ;;  %v622_v53 = vmul.f32 %v606_v49, %v558_v30 }
 0x247   :  { %v1187_v52 = vpop.eup %1186  ;;  %1113 = vmatmul.mubr.f32.gmra.mxu1 %v620_v15 }
 0x248   :  { %v621_v48 = vmul.f32 %v605_v37, %v557_v14  ;;  %v608_v55 = vadd.f32 1.0, %v1187_v52  ;;  %v889_v14 = vld [vmem:[#allocation4 + $0x58] sm:$0xff]  ;;  %v888_v52 = vld [vmem:[#allocation4 + $0x50] sm:$0xff] }
 0x249   :  { %v1189_v8 = vpop.eup %1188 }
 0x24a   :  { %1115 = vmatprep.mubr.f32.mxu1 %v621_v48  ;;  %v607_v54 = vadd.f32 1.0, %v1189_v8  ;;  %v624_v39 = vmul.f32 %v608_v55, %v560_v56 }
 0x24b   :  { %v1191_v61 = vpop.eup %1190  ;;  %1116 = vmatmul.mubr.f32.gmra.mxu1 %v622_v53 }
 0x24c   :  { %v623_v57 = vmul.f32 %v607_v54, %v559_v27  ;;  %v610_v62 = vadd.f32 1.0, %v1191_v61  ;;  %v891_v27 = vld [vmem:[#allocation4 + $0x68] sm:$0xff]  ;;  %v890_v61 = vld [vmem:[#allocation4 + $0x60] sm:$0xff] }
 0x24d   :  { %v1193_v10 = vpop.eup %1192 }
 0x24e   :  { %1118 = vmatprep.mubr.f32.mxu1 %v623_v57  ;;  %v609_v59 = vadd.f32 1.0, %v1193_v10  ;;  %v626_v12 = vmul.f32 %v610_v62, %v562_v19  ;;  %v892_v19 = vld [vmem:[#allocation4 + $0x70] sm:$0xff] }
 0x24f   :  { %1119 = vmatmul.mubr.f32.gmra.mxu1 %v624_v39 }
 0x250   :  { %v625_v63 = vmul.f32 %v609_v59, %v561_v58  ;;  %v893_v58 = vld [vmem:[#allocation4 + $0x78] sm:$0xff] }
 0x252   :  { %1121 = vmatprep.mubr.f32.mxu1 %v625_v63 }
 0x253   :  { %1122 = vmatmul.mubr.f32.gmra.mxu1 %v626_v12 }
 0x2f7   :  { %v1102_v0 = vpop.f32.mrf.mxu1 }
 0x2f8   :  { %v863_v46 = vadd.f32 %v1102_v0, %v1602_v1 }
 0x2f9   :  { %v725_v40 = vpop.f32.mrf.mxu1 }
 0x2fa   :  { %v895_v3 = vadd.f32 %v1194_v2, %v863_v46  ;;  %v862_v47 = vadd.f32 %v1602_v1, %v725_v40 }
 0x2fb   :  { %v1105_v34 = vpop.f32.mrf.mxu1 }
 0x2fc   :  { %911 = vst [vmem:[#allocation10 + $0x8] sm:$0xff] %v895_v3  ;;  %v894_v31 = vadd.f32 %v1195_v42, %v862_v47  ;;  %v865_v4 = vadd.f32 %v1105_v34, %v1602_v1 }
 0x2fd   :  { %v735_v5 = vpop.f32.mrf.mxu1 }
 0x2fe   :  { %910 = vst [vmem:[#allocation10] sm:$0xff] %v894_v31  ;;  %v897_v7 = vadd.f32 %v1196_v6, %v865_v4  ;;  %v864_v9 = vadd.f32 %v1602_v1, %v735_v5 }
 0x2ff   :  { %v1108_v18 = vpop.f32.mrf.mxu1 }
 0x300   :  { %913 = vst [vmem:[#allocation10 + $0x18] sm:$0xff] %v897_v7  ;;  %v896_v41 = vadd.f32 %v1197_v20, %v864_v9  ;;  %v867_v21 = vadd.f32 %v1108_v18, %v1602_v1 }
 0x301   :  { %v745_v22 = vpop.f32.mrf.mxu1 }
 0x302   :  { %912 = vst [vmem:[#allocation10 + $0x10] sm:$0xff] %v896_v41  ;;  %v899_v50 = vadd.f32 %v1198_v23, %v867_v21  ;;  %v866_v24 = vadd.f32 %v1602_v1, %v745_v22 }
 0x303   :  { %v1111_v25 = vpop.f32.mrf.mxu1 }
 0x304   :  { %915 = vst [vmem:[#allocation10 + $0x28] sm:$0xff] %v899_v50  ;;  %v898_v11 = vadd.f32 %v1199_v26, %v866_v24  ;;  %v869_v28 = vadd.f32 %v1111_v25, %v1602_v1 }
 0x305   :  { %v755_v29 = vpop.f32.mrf.mxu1 }
 0x306   :  { %914 = vst [vmem:[#allocation10 + $0x20] sm:$0xff] %v898_v11  ;;  %v901_v51 = vadd.f32 %v1200_v33, %v869_v28  ;;  %v868_v32 = vadd.f32 %v1602_v1, %v755_v29 }
 0x307   :  { %v1114_v35 = vpop.f32.mrf.mxu1 }
 0x308   :  { %917 = vst [vmem:[#allocation10 + $0x38] sm:$0xff] %v901_v51  ;;  %v900_v36 = vadd.f32 %v1201_v60, %v868_v32  ;;  %v871_v17 = vadd.f32 %v1114_v35, %v1602_v1 }
 0x309   :  { %v765_v38 = vpop.f32.mrf.mxu1 }
 0x30a   :  { %916 = vst [vmem:[#allocation10 + $0x30] sm:$0xff] %v900_v36  ;;  %v903_v44 = vadd.f32 %v1202_v43, %v871_v17  ;;  %v870_v45 = vadd.f32 %v1602_v1, %v765_v38 }
 0x30b   :  { %v1117_v16 = vpop.f32.mrf.mxu1 }
 0x30c   :  { %919 = vst [vmem:[#allocation10 + $0x48] sm:$0xff] %v903_v44  ;;  %v902_v15 = vadd.f32 %v886_v13, %v870_v45  ;;  %v873_v37 = vadd.f32 %v1117_v16, %v1602_v1 }
 0x30d   :  { %v775_v49 = vpop.f32.mrf.mxu1 }
 0x30e   :  { %918 = vst [vmem:[#allocation10 + $0x40] sm:$0xff] %v902_v15  ;;  %v905_v30 = vadd.f32 %v889_v14, %v873_v37  ;;  %v872_v48 = vadd.f32 %v1602_v1, %v775_v49 }
 0x30f   :  { %v1120_v8 = vpop.f32.mrf.mxu1 }
 0x310   :  { %921 = vst [vmem:[#allocation10 + $0x58] sm:$0xff] %v905_v30  ;;  %v904_v53 = vadd.f32 %v888_v52, %v872_v48  ;;  %v875_v54 = vadd.f32 %v1120_v8, %v1602_v1 }
 0x311   :  { %v785_v55 = vpop.f32.mrf.mxu1 }
 0x312   :  { %920 = vst [vmem:[#allocation10 + $0x50] sm:$0xff] %v904_v53  ;;  %v907_v56 = vadd.f32 %v891_v27, %v875_v54  ;;  %v874_v57 = vadd.f32 %v1602_v1, %v785_v55 }
 0x313   :  { %v1123_v10 = vpop.f32.mrf.mxu1 }
 0x314   :  { %923 = vst [vmem:[#allocation10 + $0x68] sm:$0xff] %v907_v56  ;;  %v906_v39 = vadd.f32 %v890_v61, %v874_v57  ;;  %v877_v59 = vadd.f32 %v1123_v10, %v1602_v1 }
 0x315   :  { %v795_v62 = vpop.f32.mrf.mxu1 }
 0x316   :  { %922 = vst [vmem:[#allocation10 + $0x60] sm:$0xff] %v906_v39  ;;  %v909_v63 = vadd.f32 %v893_v58, %v877_v59  ;;  %v876_v12 = vadd.f32 %v1602_v1, %v795_v62 }
 0x318   :  { %925 = vst [vmem:[#allocation10 + $0x78] sm:$0xff] %v909_v63  ;;  %v908_v0 = vadd.f32 %v892_v19, %v876_v12 }
 0x31a   :  { %924 = vst [vmem:[#allocation10 + $0x70] sm:$0xff] %v908_v0 }
 0x31b   :  { %1274 = shalt.err (!%p1271_p5)
}
 0x31c   :  { %937 = dma.vmem_to_hbm [thread:$0]  %s932_s20, 2048, %s1633_s7, [#allocation6], %s1291_s29, %s1291_s29, %s1292_s30  }
 0x31d   :  { %1287 = dma.done.wait [#allocation6], 2048  }
 0x31e   :  { %1288 = vsyncadd [#allocation6], 4294965248 }
 0x31f   :  { %941 = vsyncpa [#allocation5], 1 }
 0x320   :  { %942 = vsyncpa [#allocation8], 1 }
 0x321   :  { %943 = vsyncpa [#allocation6], 1 }

// kernel: tpu_custom_call.1
= control target key start
LH: loop header
LB: loop body
LE: loop exit
PB: predicated region body
PF: predicated region fallthrough
CT: control target
= control target key end

     0   :  { %12 = vsyncpa [#allocation5], 0  ;;  %s1626_s0 = inlined_call_operand.hbm [shape: f32[128,128], index: 0, kind: input, shape index: {}]   ;;  %s1627_s1 = inlined_call_operand.vmem [shape: f32[1,128], index: 1, kind: input, shape index: {}]   ;;  %s1628_s2 = inlined_call_operand.vmem [shape: f32[1,128], index: 2, kind: input, shape index: {}]   ;;  %s1629_s3 = inlined_call_operand.hbm [shape: f32[128,128], index: 3, kind: input, shape index: {}]   ;;  %s1630_s4 = inlined_call_operand.vmem [shape: f32[1,128], index: 4, kind: input, shape index: {}]   ;;  %s1631_s5 = inlined_call_operand.hbm [shape: f32[128,128], index: 5, kind: input, shape index: {}]   ;;  %s1632_s6 = inlined_call_operand.vmem [shape: f32[1,128], index: 6, kind: input, shape index: {}]   ;;  %s1633_s7 = inlined_call_operand.hbm [shape: f32[128,128], index: 7, kind: output, shape index: {}]  }
   0x1   :  { %13 = vsyncpa [#allocation8], 0 }
   0x2   :  { %14 = vsyncpa [#allocation6], 0  ;;  %s1289_s24 = smov [#allocation7]   ;;  %s1290_s26 = smov [#allocation4]  }
   0x3   :  { %s36_s25 = sshll.u32 %s1289_s24, 4  ;;  %s20_s27 = sshll.u32 %s1290_s26, 4  ;;  %s37_s25 = int_to_ptr.vmem [resolvable:$true] %s36_s25  ;;  %s21_s27 = int_to_ptr.vmem [resolvable:$true] %s20_s27 }
   0x4   :  { %s1211_s28 = scalar_lea.vmem %s37_s25, 2048  ;;  %p1216_p1 = scmp.lt.s32.totalorder %s37_s25, %s37_s25 }
   0x5   :  { %p1212_p0 = scmp.ne.s32.totalorder %s37_s25, %s1211_s28  ;;  %p1217_p2 = scmp.lt.s32.totalorder %s1211_s28, %s1211_s28 }
   0x7   :  { %p1218_p3 = por %p1217_p2, %p1216_p1 }
   0x9   :  { %p1219_p4 = pnand %p1218_p3, %p1212_p0 }
   0xb   :  { %1222 = shalt.err (!%p1219_p4)
}
   0xc   :  { %s1291_s29 = smov 128   ;;  %s1292_s30 = smov 8  }
   0xd   :  { %42 = dma.hbm_to_vmem [thread:$0]  %s1629_s3, 2048, %s37_s25, [#allocation8], %s1291_s29, %s1291_s29, %s1292_s30  }
   0xe   :  { %s1231_s10 = scalar_lea.vmem %s21_s27, 2048  ;;  %p1236_p6 = scmp.lt.s32.totalorder %s21_s27, %s21_s27 }
   0xf   :  { %p1232_p5 = scmp.ne.s32.totalorder %s21_s27, %s1231_s10  ;;  %p1237_p7 = scmp.lt.s32.totalorder %s1231_s10, %s1231_s10 }
  0x11   :  { %p1238_p8 = por %p1237_p7, %p1236_p6 }
  0x13   :  { %p1239_p9 = pnand %p1238_p8, %p1232_p5 }
  0x15   :  { %1242 = shalt.err (!%p1239_p9)
}
  0x16   :  { %26 = dma.hbm_to_vmem [thread:$0]  %s1626_s0, 2048, %s21_s27, [#allocation5], %s1291_s29, %s1291_s29, %s1292_s30  }
  0x17   :  { %s1293_s13 = smov [#allocation9]  }
  0x18   :  { %s50_s14 = sshll.u32 %s1293_s13, 4  ;;  %s51_s14 = int_to_ptr.vmem [resolvable:$true] %s50_s14 }
  0x19   :  { %s1251_s15 = scalar_lea.vmem %s51_s14, 2048  ;;  %p1256_p11 = scmp.lt.s32.totalorder %s51_s14, %s51_s14 }
  0x1a   :  { %p1252_p10 = scmp.ne.s32.totalorder %s51_s14, %s1251_s15  ;;  %p1257_p12 = scmp.lt.s32.totalorder %s1251_s15, %s1251_s15 }
  0x1c   :  { %p1258_p13 = por %p1257_p12, %p1256_p11 }
  0x1e   :  { %p1259_p0 = pnand %p1258_p13, %p1252_p10 }
  0x20   :  { %1262 = shalt.err (!%p1259_p0)
}
  0x21   :  { %56 = dma.hbm_to_vmem [thread:$0]  %s1631_s5, 2048, %s51_s14, [#allocation8], %s1291_s29, %s1291_s29, %s1292_s30  }
  0x22   :  { %1283 = dma.done.wait [#allocation5], 2048  }
  0x23   :  { %1284 = vsyncadd [#allocation5], 4294965248 }
  0x24   :  { %1285 = dma.done.wait [#allocation8], 4096  }
  0x25   :  { %1286 = vsyncadd [#allocation8], 4294963200  ;;  %v72_v0 = vld [vmem:[#allocation4] sm:$0xff]  ;;  %v74_v1 = vld [vmem:[#allocation4 + $0x10] sm:$0xff]  ;;  %v152_v18 = vlaneseq }
  0x26   :  { %88 = vadd.xlane.f32.xlu0 %v72_v0  ;;  %92 = vadd.xlane.f32.xlu1 %v74_v1  ;;  %v73_v2 = vld [vmem:[#allocation4 + $0x8] sm:$0xff]  ;;  %v75_v3 = vld [vmem:[#allocation4 + $0x18] sm:$0xff]  ;;  %v1353_v4 = vld [vmem:[#allocation4 + $0x20] sm:$0xff] }
  0x27   :  { %v1355_v5 = vld [vmem:[#allocation4 + $0x28] sm:$0xff]  ;;  %v1359_v6 = vld [vmem:[#allocation4 + $0x30] sm:$0xff]  ;;  %v1361_v7 = vld [vmem:[#allocation4 + $0x38] sm:$0xff]  ;;  %v1389_v19 = vand.u32 127, %v152_v18 }
  0x28   :  { %v1365_v8 = vld [vmem:[#allocation4 + $0x40] sm:$0xff]  ;;  %v1367_v9 = vld [vmem:[#allocation4 + $0x48] sm:$0xff]  ;;  %v1371_v10 = vld [vmem:[#allocation4 + $0x50] sm:$0xff] }
  0x29   :  { %v1373_v11 = vld [vmem:[#allocation4 + $0x58] sm:$0xff]  ;;  %v1377_v12 = vld [vmem:[#allocation4 + $0x60] sm:$0xff]  ;;  %v1379_v13 = vld [vmem:[#allocation4 + $0x68] sm:$0xff]  ;;  %vm154_vm0 = vcmp.lt.s32.totalorder %v1389_v19, 16 }
  0x2a   :  { %90 = vadd.xlane.f32.xlu0 %v73_v2  ;;  %94 = vadd.xlane.f32.xlu1 %v75_v3  ;;  %v1383_v14 = vld [vmem:[#allocation4 + $0x70] sm:$0xff]  ;;  %v1385_v15 = vld [vmem:[#allocation4 + $0x78] sm:$0xff]  ;;  %v392_v62 = vld [vmem:[#allocation7 + $0x68] sm:$0xff] }
  0x2b   :  { %v394_v16 = vld [vmem:[#allocation7 + $0x78] sm:$0xff]  ;;  %v393_v17 = vld [vmem:[#allocation7 + $0x70] sm:$0xff] }
  0x2c   :  { %1012 = vmatprep.subr.mxu0 %v394_v16  ;;  %v382_v19 = vld [vmem:[#allocation7 + $0x18] sm:$0xff] }
  0x2d   :  { %1013 = vmatpush3.msra.mxu0 %v394_v16 }
  0x2e   :  { %96 = vadd.xlane.f32.xlu0 %v1353_v4  ;;  %98 = vadd.xlane.f32.xlu1 %v1355_v5 }
  0x2f   :  { %1014 = vmatprep.subr.mxu0 %v393_v17 }
  0x30   :  { %1015 = vmatpush3.msra.mxu0 %v393_v17  ;;  %v390_v17 = vld [vmem:[#allocation7 + $0x58] sm:$0xff] }
  0x31   :  { %1016 = vmatprep.subr.mxu0 %v392_v62 }
  0x32   :  { %100 = vadd.xlane.f32.xlu0 %v1359_v6  ;;  %102 = vadd.xlane.f32.xlu1 %v1361_v7 }
  0x33   :  { %1017 = vmatpush3.msra.mxu0 %v392_v62 }
  0x36   :  { %104 = vadd.xlane.f32.xlu0 %v1365_v8  ;;  %106 = vadd.xlane.f32.xlu1 %v1367_v9 }
  0x3a   :  { %108 = vadd.xlane.f32.xlu0 %v1371_v10  ;;  %110 = vadd.xlane.f32.xlu1 %v1373_v11 }
  0x3e   :  { %112 = vadd.xlane.f32.xlu0 %v1377_v12  ;;  %114 = vadd.xlane.f32.xlu1 %v1379_v13 }
  0x42   :  { %116 = vadd.xlane.f32.xlu0 %v1383_v14  ;;  %118 = vadd.xlane.f32.xlu1 %v1385_v15 }
  0xaf   :  { %v89_v20 = vpop.xlane.xlu0 %88  ;;  %v93_v21 = vpop.xlane.xlu1 %92 }
  0xb0   :  { %v120_v22 = vmul.f32 0.0625, %v89_v20  ;;  %v122_v23 = vmul.f32 0.0625, %v93_v21 }
  0xb2   :  { %v136_v24 = vsub.f32 %v72_v0, %v120_v22  ;;  %v138_v25 = vsub.f32 %v74_v1, %v122_v23 }
  0xb3   :  { %v91_v26 = vpop.xlane.xlu0 %90  ;;  %v95_v27 = vpop.xlane.xlu1 %94 }
  0xb4   :  { %v121_v28 = vmul.f32 0.0625, %v91_v26  ;;  %v123_v29 = vmul.f32 0.0625, %v95_v27  ;;  %v1394_v30 = vsel %vm154_vm0, %v136_v24, 0.0  ;;  %v1398_v31 = vsel %vm154_vm0, %v138_v25, 0.0  ;;  %v389_v24 = vld [vmem:[#allocation7 + $0x50] sm:$0xff] }
  0xb5   :  { %v173_v32 = vmul.f32 %v1394_v30, %v1394_v30  ;;  %v175_v37 = vmul.f32 %v1398_v31, %v1398_v31 }
  0xb6   :  { %v137_v33 = vsub.f32 %v73_v2, %v121_v28  ;;  %v139_v34 = vsub.f32 %v75_v3, %v123_v29  ;;  %v391_v2 = vld [vmem:[#allocation7 + $0x60] sm:$0xff]  ;;  %v388_v28 = vld [vmem:[#allocation7 + $0x48] sm:$0xff] }
  0xb7   :  { %189 = vadd.xlane.f32.xlu0 %v173_v32  ;;  %v97_v35 = vpop.xlane.xlu0 %96  ;;  %v99_v36 = vpop.xlane.xlu1 %98  ;;  %1018 = vmatprep.subr.mxu0 %v391_v2 }
  0xb8   :  { %v124_v38 = vmul.f32 0.0625, %v97_v35  ;;  %v125_v39 = vmul.f32 0.0625, %v99_v36  ;;  %v1406_v40 = vsel %vm154_vm0, %v137_v33, 0.0  ;;  %v1410_v41 = vsel %vm154_vm0, %v139_v34, 0.0  ;;  %1019 = vmatpush3.msra.mxu0 %v391_v2  ;;  %v387_v36 = vld [vmem:[#allocation7 + $0x40] sm:$0xff] }
  0xb9   :  { %v174_v42 = vmul.f32 %v1406_v40, %v1406_v40  ;;  %v176_v47 = vmul.f32 %v1410_v41, %v1410_v41  ;;  %1020 = vmatprep.subr.mxu0 %v390_v17 }
  0xba   :  { %v140_v43 = vsub.f32 %v1353_v4, %v124_v38  ;;  %v141_v44 = vsub.f32 %v1355_v5, %v125_v39  ;;  %1021 = vmatpush3.msra.mxu0 %v390_v17 }
  0xbb   :  { %193 = vadd.xlane.f32.xlu0 %v175_v37  ;;  %191 = vadd.xlane.f32.xlu1 %v174_v42  ;;  %v101_v45 = vpop.xlane.xlu0 %100  ;;  %v103_v46 = vpop.xlane.xlu1 %102 }
  0xbc   :  { %v126_v48 = vmul.f32 0.0625, %v101_v45  ;;  %v127_v49 = vmul.f32 0.0625, %v103_v46  ;;  %v1420_v50 = vsel %vm154_vm0, %v140_v43, 0.0  ;;  %v1424_v51 = vsel %vm154_vm0, %v141_v44, 0.0  ;;  %1022 = vmatprep.subr.mxu0 %v389_v24  ;;  %v386_v44 = vld [vmem:[#allocation7 + $0x38] sm:$0xff] }
  0xbd   :  { %v177_v52 = vmul.f32 %v1420_v50, %v1420_v50  ;;  %v178_v57 = vmul.f32 %v1424_v51, %v1424_v51  ;;  %1023 = vmatpush3.msra.mxu0 %v389_v24 }
  0xbe   :  { %v142_v53 = vsub.f32 %v1359_v6, %v126_v48  ;;  %v143_v54 = vsub.f32 %v1361_v7, %v127_v49  ;;  %1024 = vmatprep.subr.mxu0 %v388_v28  ;;  %v384_v49 = vld [vmem:[#allocation7 + $0x28] sm:$0xff] }
  0xbf   :  { %195 = vadd.xlane.f32.xlu1 %v176_v47  ;;  %197 = vadd.xlane.f32.xlu0 %v177_v52  ;;  %v105_v55 = vpop.xlane.xlu0 %104  ;;  %v107_v56 = vpop.xlane.xlu1 %106  ;;  %v383_v52 = vld [vmem:[#allocation7 + $0x20] sm:$0xff] }
  0xc0   :  { %v128_v58 = vmul.f32 0.0625, %v105_v55  ;;  %v129_v59 = vmul.f32 0.0625, %v107_v56  ;;  %v1434_v60 = vsel %vm154_vm0, %v142_v53, 0.0  ;;  %v1438_v61 = vsel %vm154_vm0, %v143_v54, 0.0  ;;  %1025 = vmatpush3.msra.mxu0 %v388_v28  ;;  %v381_v53 = vld [vmem:[#allocation7 + $0x10] sm:$0xff]  ;;  %v380_v54 = vld [vmem:[#allocation7 + $0x8] sm:$0xff] }
  0xc1   :  { %v179_v63 = vmul.f32 %v1434_v60, %v1434_v60  ;;  %v180_v5 = vmul.f32 %v1438_v61, %v1438_v61  ;;  %1026 = vmatprep.subr.mxu0 %v387_v36  ;;  %v379_v55 = vld [vmem:[#allocation7] sm:$0xff]  ;;  %v658_v56 = vld [vmem:[#allocation9 + $0x78] sm:$0xff] }
  0xc2   :  { %v144_v0 = vsub.f32 %v1365_v8, %v128_v58  ;;  %v145_v1 = vsub.f32 %v1367_v9, %v129_v59  ;;  %1027 = vmatpush3.msra.mxu0 %v387_v36  ;;  %1068 = vmatprep.subr.mxu1 %v658_v56  ;;  %v656_v58 = vld [vmem:[#allocation9 + $0x68] sm:$0xff] }
  0xc3   :  { %199 = vadd.xlane.f32.xlu1 %v178_v57  ;;  %201 = vadd.xlane.f32.xlu0 %v179_v63  ;;  %v109_v3 = vpop.xlane.xlu0 %108  ;;  %v111_v4 = vpop.xlane.xlu1 %110  ;;  %v657_v57 = vld [vmem:[#allocation9 + $0x70] sm:$0xff] }
  0xc4   :  { %v130_v6 = vmul.f32 0.0625, %v109_v3  ;;  %v131_v7 = vmul.f32 0.0625, %v111_v4  ;;  %v1448_v16 = vsel %vm154_vm0, %v144_v0, 0.0  ;;  %v1452_v8 = vsel %vm154_vm0, %v145_v1, 0.0  ;;  %1028 = vmatprep.subr.mxu0 %v386_v44  ;;  %1069 = vmatpush3.msra.mxu1 %v658_v56 }
  0xc5   :  { %v181_v9 = vmul.f32 %v1448_v16, %v1448_v16  ;;  %v182_v23 = vmul.f32 %v1452_v8, %v1452_v8  ;;  %1029 = vmatpush3.msra.mxu0 %v386_v44  ;;  %1070 = vmatprep.subr.mxu1 %v657_v57 }
  0xc6   :  { %v146_v18 = vsub.f32 %v1371_v10, %v130_v6  ;;  %v147_v20 = vsub.f32 %v1373_v11, %v131_v7  ;;  %1071 = vmatpush3.msra.mxu1 %v657_v57 }
  0xc7   :  { %203 = vadd.xlane.f32.xlu1 %v180_v5  ;;  %205 = vadd.xlane.f32.xlu0 %v181_v9  ;;  %v113_v21 = vpop.xlane.xlu0 %112  ;;  %v115_v22 = vpop.xlane.xlu1 %114 }
  0xc8   :  { %v132_v25 = vmul.f32 0.0625, %v113_v21  ;;  %v133_v26 = vmul.f32 0.0625, %v115_v22  ;;  %v1462_v27 = vsel %vm154_vm0, %v146_v18, 0.0  ;;  %v1466_v10 = vsel %vm154_vm0, %v147_v20, 0.0  ;;  %1072 = vmatprep.subr.mxu1 %v656_v58 }
  0xc9   :  { %v183_v11 = vmul.f32 %v1462_v27, %v1462_v27  ;;  %v184_v35 = vmul.f32 %v1466_v10, %v1466_v10  ;;  %1073 = vmatpush3.msra.mxu1 %v656_v58 }
  0xca   :  { %v148_v29 = vsub.f32 %v1377_v12, %v132_v25  ;;  %v149_v32 = vsub.f32 %v1379_v13, %v133_v26 }
  0xcb   :  { %207 = vadd.xlane.f32.xlu1 %v182_v23  ;;  %209 = vadd.xlane.f32.xlu0 %v183_v11  ;;  %v117_v33 = vpop.xlane.xlu0 %116  ;;  %v119_v34 = vpop.xlane.xlu1 %118 }
  0xcc   :  { %v134_v37 = vmul.f32 0.0625, %v117_v33  ;;  %v135_v38 = vmul.f32 0.0625, %v119_v34  ;;  %v1476_v39 = vsel %vm154_vm0, %v148_v29, 0.0  ;;  %v1480_v12 = vsel %vm154_vm0, %v149_v32, 0.0  ;;  %v1503_v34 = vld [vmem:[%s1627_s1] ss:$0 sm:$0xff] }
  0xcd   :  { %v185_v13 = vmul.f32 %v1476_v39, %v1476_v39  ;;  %v186_v45 = vmul.f32 %v1480_v12, %v1480_v12 }
  0xce   :  { %v150_v42 = vsub.f32 %v1383_v14, %v134_v37  ;;  %v151_v43 = vsub.f32 %v1385_v15, %v135_v38  ;;  %v385_v15 = vld [vmem:[#allocation7 + $0x30] sm:$0xff] }
  0xcf   :  { %211 = vadd.xlane.f32.xlu1 %v184_v35  ;;  %213 = vadd.xlane.f32.xlu0 %v185_v13 }
  0xd0   :  { %v1490_v46 = vsel %vm154_vm0, %v150_v42, 0.0  ;;  %v1494_v47 = vsel %vm154_vm0, %v151_v43, 0.0  ;;  %1030 = vmatprep.subr.mxu0 %v385_v15  ;;  %v1509_v42 = vld [vmem:[%s1628_s2] ss:$0 sm:$0xff] }
  0xd1   :  { %v187_v14 = vmul.f32 %v1490_v46, %v1490_v46  ;;  %v188_v48 = vmul.f32 %v1494_v47, %v1494_v47  ;;  %1031 = vmatpush3.msra.mxu0 %v385_v15 }
  0xd2   :  { %1032 = vmatprep.subr.mxu0 %v384_v49 }
  0xd3   :  { %215 = vadd.xlane.f32.xlu1 %v186_v45  ;;  %217 = vadd.xlane.f32.xlu0 %v187_v14 }
  0xd4   :  { %1033 = vmatpush3.msra.mxu0 %v384_v49 }
  0xd5   :  { %1034 = vmatprep.subr.mxu0 %v383_v52 }
  0xd6   :  { %1035 = vmatpush3.msra.mxu0 %v383_v52 }
  0xd7   :  { %219 = vadd.xlane.f32.xlu1 %v188_v48  ;;  %1036 = vmatprep.subr.mxu0 %v382_v19 }
  0xd8   :  { %1037 = vmatpush3.msra.mxu0 %v382_v19 }
  0xd9   :  { %1038 = vmatprep.subr.mxu0 %v381_v53 }
  0xda   :  { %1039 = vmatpush3.msra.mxu0 %v381_v53 }
  0xdb   :  { %1040 = vmatprep.subr.mxu0 %v380_v54 }
  0xdc   :  { %1041 = vmatpush3.msra.mxu0 %v380_v54 }
  0xdd   :  { %1042 = vmatprep.subr.mxu0 %v379_v55 }
  0xde   :  { %1043 = vmatpush3.msra.mxu0 %v379_v55 }
 0x140   :  { %v190_v59 = vpop.xlane.xlu0 %189 }
 0x141   :  { %v221_v62 = vmul.f32 0.0625, %v190_v59 }
 0x143   :  { %v237_v63 = vadd.f32 1e-05, %v221_v62 }
 0x144   :  { %v192_v0 = vpop.xlane.xlu1 %191  ;;  %v194_v1 = vpop.xlane.xlu0 %193 }
 0x145   :  { %1130 = vrsqrt.f32 %v237_v63  ;;  %v222_v2 = vmul.f32 0.0625, %v192_v0  ;;  %v223_v3 = vmul.f32 0.0625, %v194_v1 }
 0x147   :  { %v238_v4 = vadd.f32 1e-05, %v222_v2  ;;  %v239_v5 = vadd.f32 1e-05, %v223_v3 }
 0x148   :  { %v196_v6 = vpop.xlane.xlu1 %195  ;;  %v198_v7 = vpop.xlane.xlu0 %197 }
 0x149   :  { %1132 = vrsqrt.f32 %v238_v4  ;;  %v224_v9 = vmul.f32 0.0625, %v196_v6  ;;  %v225_v17 = vmul.f32 0.0625, %v198_v7 }
 0x14a   :  { %1134 = vrsqrt.f32 %v239_v5 }
 0x14b   :  { %v240_v18 = vadd.f32 1e-05, %v224_v9  ;;  %v241_v20 = vadd.f32 1e-05, %v225_v17 }
 0x14c   :  { %v200_v21 = vpop.xlane.xlu1 %199  ;;  %v202_v22 = vpop.xlane.xlu0 %201 }
 0x14d   :  { %1136 = vrsqrt.f32 %v240_v18  ;;  %v226_v23 = vmul.f32 0.0625, %v200_v21  ;;  %v227_v24 = vmul.f32 0.0625, %v202_v22 }
 0x14e   :  { %1138 = vrsqrt.f32 %v241_v20 }
 0x14f   :  { %v242_v25 = vadd.f32 1e-05, %v226_v23  ;;  %v243_v26 = vadd.f32 1e-05, %v227_v24 }
 0x150   :  { %v204_v11 = vpop.xlane.xlu1 %203  ;;  %v206_v28 = vpop.xlane.xlu0 %205 }
 0x151   :  { %1140 = vrsqrt.f32 %v242_v25  ;;  %v228_v29 = vmul.f32 0.0625, %v204_v11  ;;  %v229_v32 = vmul.f32 0.0625, %v206_v28 }
 0x152   :  { %v1131_v33 = vpop.eup %1130  ;;  %1142 = vrsqrt.f32 %v243_v26 }
 0x153   :  { %v244_v35 = vadd.f32 1e-05, %v228_v29  ;;  %v245_v36 = vadd.f32 1e-05, %v229_v32  ;;  %v269_v37 = vmul.f32 %v1131_v33, %v1394_v30 }
 0x154   :  { %v208_v38 = vpop.xlane.xlu1 %207  ;;  %v210_v13 = vpop.xlane.xlu0 %209 }
 0x155   :  { %1144 = vrsqrt.f32 %v244_v35  ;;  %v230_v43 = vmul.f32 0.0625, %v208_v38  ;;  %v231_v44 = vmul.f32 0.0625, %v210_v13  ;;  %v292_v45 = vmul.f32 %v1503_v34, %v269_v37 }
 0x156   :  { %v1133_v14 = vpop.eup %1132  ;;  %1146 = vrsqrt.f32 %v245_v36 }
 0x157   :  { %v1135_v15 = vpop.eup %1134  ;;  %v246_v48 = vadd.f32 1e-05, %v230_v43  ;;  %v247_v49 = vadd.f32 1e-05, %v231_v44  ;;  %v315_v52 = vadd.f32 %v1509_v42, %v292_v45  ;;  %v270_v30 = vmul.f32 %v1133_v14, %v1406_v40 }
 0x158   :  { %v212_v19 = vpop.xlane.xlu1 %211  ;;  %v214_v53 = vpop.xlane.xlu0 %213  ;;  %v271_v54 = vmul.f32 %v1135_v15, %v1398_v31 }
 0x159   :  { %1148 = vrsqrt.f32 %v246_v48  ;;  %v232_v55 = vmul.f32 0.0625, %v212_v19  ;;  %v233_v56 = vmul.f32 0.0625, %v214_v53  ;;  %1044 = vmatprep.mubr.f32.mxu0 %v315_v52  ;;  %v293_v57 = vmul.f32 %v1503_v34, %v270_v30 }
 0x15a   :  { %v1137_v58 = vpop.eup %1136  ;;  %1150 = vrsqrt.f32 %v247_v49  ;;  %v294_v59 = vmul.f32 %v1503_v34, %v271_v54 }
 0x15b   :  { %v1139_v62 = vpop.eup %1138  ;;  %v248_v63 = vadd.f32 1e-05, %v232_v55  ;;  %v249_v0 = vadd.f32 1e-05, %v233_v56  ;;  %v316_v1 = vadd.f32 %v1509_v42, %v293_v57  ;;  %v272_v40 = vmul.f32 %v1137_v58, %v1410_v41 }
 0x15c   :  { %v216_v2 = vpop.xlane.xlu1 %215  ;;  %v218_v3 = vpop.xlane.xlu0 %217  ;;  %v317_v31 = vadd.f32 %v1509_v42, %v294_v59  ;;  %v273_v4 = vmul.f32 %v1139_v62, %v1420_v50 }
 0x15d   :  { %1152 = vrsqrt.f32 %v248_v63  ;;  %v234_v5 = vmul.f32 0.0625, %v216_v2  ;;  %v235_v6 = vmul.f32 0.0625, %v218_v3  ;;  %1045 = vmatmul.mubr.f32.vlgmr.msra.gmra.mxu0 %v316_v1  ;;  %v295_v7 = vmul.f32 %v1503_v34, %v272_v40  ;;  %v654_v40 = vld [vmem:[#allocation9 + $0x58] sm:$0xff]  ;;  %v653_v2 = vld [vmem:[#allocation9 + $0x50] sm:$0xff]  ;;  %v652_v3 = vld [vmem:[#allocation9 + $0x48] sm:$0xff] }
 0x15e   :  { %v1141_v9 = vpop.eup %1140  ;;  %1154 = vrsqrt.f32 %v249_v0  ;;  %1047 = vmatprep.mubr.f32.mxu0 %v317_v31  ;;  %v296_v17 = vmul.f32 %v1503_v34, %v273_v4  ;;  %v648_v31 = vld [vmem:[#allocation9 + $0x28] sm:$0xff]  ;;  %v647_v4 = vld [vmem:[#allocation9 + $0x20] sm:$0xff] }
 0x15f   :  { %v1143_v18 = vpop.eup %1142  ;;  %v250_v20 = vadd.f32 1e-05, %v234_v5  ;;  %v251_v41 = vadd.f32 1e-05, %v235_v6  ;;  %v318_v21 = vadd.f32 %v1509_v42, %v295_v7  ;;  %v274_v22 = vmul.f32 %v1141_v9, %v1424_v51  ;;  %v646_v5 = vld [vmem:[#allocation9 + $0x18] sm:$0xff]  ;;  %v645_v6 = vld [vmem:[#allocation9 + $0x10] sm:$0xff] }
 0x160   :  { %v220_v23 = vpop.xlane.xlu1 %219  ;;  %v319_v50 = vadd.f32 %v1509_v42, %v296_v17  ;;  %v275_v24 = vmul.f32 %v1143_v18, %v1434_v60  ;;  %v644_v7 = vld [vmem:[#allocation9 + $0x8] sm:$0xff]  ;;  %v643_v9 = vld [vmem:[#allocation9] sm:$0xff] }
 0x161   :  { %1156 = vrsqrt.f32 %v250_v20  ;;  %v236_v25 = vmul.f32 0.0625, %v220_v23  ;;  %1048 = vmatmul.mubr.f32.gmra.mxu0 %v318_v21  ;;  %v297_v26 = vmul.f32 %v1503_v34, %v274_v22  ;;  %v1561_v17 = vld [vmem:[%s1630_s4] ss:$0 sm:$0xff] }
 0x162   :  { %v1145_v11 = vpop.eup %1144  ;;  %1158 = vrsqrt.f32 %v251_v41  ;;  %1050 = vmatprep.mubr.f32.mxu0 %v319_v50  ;;  %v298_v28 = vmul.f32 %v1503_v34, %v275_v24 }
 0x163   :  { %v1147_v29 = vpop.eup %1146  ;;  %v252_v32 = vadd.f32 1e-05, %v236_v25  ;;  %v320_v33 = vadd.f32 %v1509_v42, %v297_v26  ;;  %v276_v51 = vmul.f32 %v1145_v11, %v1438_v61 }
 0x164   :  { %v321_v35 = vadd.f32 %v1509_v42, %v298_v28  ;;  %v277_v60 = vmul.f32 %v1147_v29, %v1448_v16 }
 0x165   :  { %1160 = vrsqrt.f32 %v252_v32  ;;  %1051 = vmatmul.mubr.f32.gmra.mxu0 %v320_v33  ;;  %v299_v36 = vmul.f32 %v1503_v34, %v276_v51 }
 0x166   :  { %v1149_v37 = vpop.eup %1148  ;;  %1053 = vmatprep.mubr.f32.mxu0 %v321_v35  ;;  %v300_v38 = vmul.f32 %v1503_v34, %v277_v60 }
 0x167   :  { %v1151_v13 = vpop.eup %1150  ;;  %v322_v43 = vadd.f32 %v1509_v42, %v299_v36  ;;  %v278_v44 = vmul.f32 %v1149_v37, %v1452_v8 }
 0x168   :  { %v323_v45 = vadd.f32 %v1509_v42, %v300_v38  ;;  %v279_v61 = vmul.f32 %v1151_v13, %v1462_v27 }
 0x169   :  { %1054 = vmatmul.mubr.f32.gmra.mxu0 %v322_v43  ;;  %v301_v16 = vmul.f32 %v1503_v34, %v278_v44 }
 0x16a   :  { %v1153_v14 = vpop.eup %1152  ;;  %1056 = vmatprep.mubr.f32.mxu0 %v323_v45  ;;  %v302_v15 = vmul.f32 %v1503_v34, %v279_v61 }
 0x16b   :  { %v1155_v48 = vpop.eup %1154  ;;  %v324_v49 = vadd.f32 %v1509_v42, %v301_v16  ;;  %v280_v52 = vmul.f32 %v1153_v14, %v1466_v10 }
 0x16c   :  { %v325_v30 = vadd.f32 %v1509_v42, %v302_v15  ;;  %v281_v8 = vmul.f32 %v1155_v48, %v1476_v39 }
 0x16d   :  { %1057 = vmatmul.mubr.f32.gmra.mxu0 %v324_v49  ;;  %v303_v19 = vmul.f32 %v1503_v34, %v280_v52 }
 0x16e   :  { %v1157_v27 = vpop.eup %1156  ;;  %1059 = vmatprep.mubr.f32.mxu0 %v325_v30  ;;  %v304_v53 = vmul.f32 %v1503_v34, %v281_v8 }
 0x16f   :  { %v1159_v54 = vpop.eup %1158  ;;  %v326_v55 = vadd.f32 %v1509_v42, %v303_v19  ;;  %v282_v56 = vmul.f32 %v1157_v27, %v1480_v12 }
 0x170   :  { %v327_v57 = vadd.f32 %v1509_v42, %v304_v53  ;;  %v283_v10 = vmul.f32 %v1159_v54, %v1490_v46  ;;  %v655_v46 = vld [vmem:[#allocation9 + $0x60] sm:$0xff] }
 0x171   :  { %1060 = vmatmul.mubr.f32.gmra.mxu0 %v326_v55  ;;  %v305_v58 = vmul.f32 %v1503_v34, %v282_v56  ;;  %1074 = vmatprep.subr.mxu1 %v655_v46 }
 0x172   :  { %v1161_v39 = vpop.eup %1160  ;;  %1062 = vmatprep.mubr.f32.mxu0 %v327_v57  ;;  %v306_v59 = vmul.f32 %v1503_v34, %v283_v10  ;;  %1075 = vmatpush3.msra.mxu1 %v655_v46 }
 0x173   :  { %v328_v62 = vadd.f32 %v1509_v42, %v305_v58  ;;  %v284_v63 = vmul.f32 %v1161_v39, %v1494_v47  ;;  %1076 = vmatprep.subr.mxu1 %v654_v40  ;;  %v651_v47 = vld [vmem:[#allocation9 + $0x40] sm:$0xff] }
 0x174   :  { %v329_v0 = vadd.f32 %v1509_v42, %v306_v59  ;;  %1077 = vmatpush3.msra.mxu1 %v654_v40 }
 0x175   :  { %1063 = vmatmul.mubr.f32.gmra.mxu0 %v328_v62  ;;  %v307_v12 = vmul.f32 %v1503_v34, %v284_v63  ;;  %1078 = vmatprep.subr.mxu1 %v653_v2  ;;  %v650_v34 = vld [vmem:[#allocation9 + $0x38] sm:$0xff] }
 0x176   :  { %1065 = vmatprep.mubr.f32.mxu0 %v329_v0  ;;  %1079 = vmatpush3.msra.mxu1 %v653_v2 }
 0x177   :  { %v330_v1 = vadd.f32 %v1509_v42, %v307_v12  ;;  %1080 = vmatprep.subr.mxu1 %v652_v3  ;;  %v649_v42 = vld [vmem:[#allocation9 + $0x30] sm:$0xff] }
 0x178   :  { %1081 = vmatpush3.msra.mxu1 %v652_v3 }
 0x179   :  { %1066 = vmatmul.mubr.f32.gmra.mxu0 %v330_v1  ;;  %1082 = vmatprep.subr.mxu1 %v651_v47 }
 0x17a   :  { %1083 = vmatpush3.msra.mxu1 %v651_v47 }
 0x17b   :  { %1084 = vmatprep.subr.mxu1 %v650_v34 }
 0x17c   :  { %1085 = vmatpush3.msra.mxu1 %v650_v34 }
 0x17d   :  { %1086 = vmatprep.subr.mxu1 %v649_v42 }
 0x17e   :  { %1087 = vmatpush3.msra.mxu1 %v649_v42 }
 0x17f   :  { %1088 = vmatprep.subr.mxu1 %v648_v31 }
 0x180   :  { %1089 = vmatpush3.msra.mxu1 %v648_v31 }
 0x181   :  { %1090 = vmatprep.subr.mxu1 %v647_v4 }
 0x182   :  { %1091 = vmatpush3.msra.mxu1 %v647_v4 }
 0x183   :  { %1092 = vmatprep.subr.mxu1 %v646_v5 }
 0x184   :  { %1093 = vmatpush3.msra.mxu1 %v646_v5 }
 0x185   :  { %1094 = vmatprep.subr.mxu1 %v645_v6 }
 0x186   :  { %1095 = vmatpush3.msra.mxu1 %v645_v6 }
 0x187   :  { %1096 = vmatprep.subr.mxu1 %v644_v7 }
 0x188   :  { %1097 = vmatpush3.msra.mxu1 %v644_v7 }
 0x189   :  { %1098 = vmatprep.subr.mxu1 %v643_v9 }
 0x18a   :  { %1099 = vmatpush3.msra.mxu1 %v643_v9 }
 0x21d   :  { %v1046_v18 = vpop.f32.mrf.mxu0 }
 0x21e   :  { %v474_v20 = vadd.f32 %v1046_v18, %v1561_v17 }
 0x21f   :  { %v468_v41 = vpop.f32.mrf.mxu0 }
 0x220   :  { %v564_v21 = vmul.f32 0.70710677, %v474_v20  ;;  %v469_v22 = vadd.f32 %v1561_v17, %v468_v41  ;;  %v548_v53 = vmul.f32 0.5, %v474_v20 }
 0x221   :  { %v1049_v23 = vpop.f32.mrf.mxu0 }
 0x222   :  { %1162 = verf.f32 %v564_v21  ;;  %v563_v50 = vmul.f32 0.70710677, %v469_v22  ;;  %v484_v24 = vadd.f32 %v1049_v23, %v1561_v17  ;;  %v547_v55 = vmul.f32 0.5, %v469_v22 }
 0x223   :  { %v478_v25 = vpop.f32.mrf.mxu0 }
 0x224   :  { %1164 = verf.f32 %v563_v50  ;;  %v566_v26 = vmul.f32 0.70710677, %v484_v24  ;;  %v479_v11 = vadd.f32 %v1561_v17, %v478_v25  ;;  %v550_v3 = vmul.f32 0.5, %v484_v24 }
 0x225   :  { %v1052_v28 = vpop.f32.mrf.mxu0 }
 0x226   :  { %1166 = verf.f32 %v566_v26  ;;  %v565_v29 = vmul.f32 0.70710677, %v479_v11  ;;  %v494_v32 = vadd.f32 %v1052_v28, %v1561_v17  ;;  %v549_v46 = vmul.f32 0.5, %v479_v11 }
 0x227   :  { %v488_v33 = vpop.f32.mrf.mxu0 }
 0x228   :  { %1168 = verf.f32 %v565_v29  ;;  %v568_v51 = vmul.f32 0.70710677, %v494_v32  ;;  %v489_v35 = vadd.f32 %v1561_v17, %v488_v33  ;;  %v552_v20 = vmul.f32 0.5, %v494_v32 }
 0x229   :  { %v1055_v60 = vpop.f32.mrf.mxu0 }
 0x22a   :  { %1170 = verf.f32 %v568_v51  ;;  %v567_v36 = vmul.f32 0.70710677, %v489_v35  ;;  %v1570_v37 = vadd.f32 %v1055_v60, %v1561_v17  ;;  %v551_v41 = vmul.f32 0.5, %v489_v35 }
 0x22b   :  { %v498_v38 = vpop.f32.mrf.mxu0 }
 0x22c   :  { %1172 = verf.f32 %v567_v36  ;;  %v570_v13 = vmul.f32 0.70710677, %v1570_v37  ;;  %v499_v43 = vadd.f32 %v1561_v17, %v498_v38  ;;  %v554_v32 = vmul.f32 0.5, %v1570_v37 }
 0x22d   :  { %v1058_v44 = vpop.f32.mrf.mxu0 }
 0x22e   :  { %1174 = verf.f32 %v570_v13  ;;  %v569_v45 = vmul.f32 0.70710677, %v499_v43  ;;  %v1575_v61 = vadd.f32 %v1058_v44, %v1561_v17  ;;  %v553_v25 = vmul.f32 0.5, %v499_v43 }
 0x22f   :  { %v1163_v16 = vpop.eup %1162  ;;  %v508_v14 = vpop.f32.mrf.mxu0 }
 0x230   :  { %1176 = verf.f32 %v569_v45  ;;  %v572_v15 = vmul.f32 0.70710677, %v1575_v61  ;;  %v1579_v48 = vadd.f32 %v1561_v17, %v508_v14  ;;  %v596_v30 = vadd.f32 1.0, %v1163_v16 }
 0x231   :  { %v1165_v49 = vpop.eup %1164  ;;  %v1061_v52 = vpop.f32.mrf.mxu0  ;;  %v556_v44 = vmul.f32 0.5, %v1575_v61 }
 0x232   :  { %1178 = verf.f32 %v572_v15  ;;  %v571_v8 = vmul.f32 0.70710677, %v1579_v48  ;;  %v1583_v19 = vadd.f32 %v1061_v52, %v1561_v17  ;;  %v595_v56 = vadd.f32 1.0, %v1165_v49 }
 0x233   :  { %v1167_v27 = vpop.eup %1166  ;;  %v518_v54 = vpop.f32.mrf.mxu0  ;;  %v612_v62 = vmul.f32 %v596_v30, %v548_v53  ;;  %v555_v36 = vmul.f32 0.5, %v1579_v48 }
 0x234   :  { %1180 = verf.f32 %v571_v8  ;;  %v574_v57 = vmul.f32 0.70710677, %v1583_v19  ;;  %v519_v10 = vadd.f32 %v1561_v17, %v518_v54  ;;  %v611_v59 = vmul.f32 %v595_v56, %v547_v55 }
 0x235   :  { %v1169_v58 = vpop.eup %1168  ;;  %v1064_v39 = vpop.f32.mrf.mxu0  ;;  %v598_v12 = vadd.f32 1.0, %v1167_v27  ;;  %v558_v30 = vmul.f32 0.5, %v1583_v19 }
 0x236   :  { %1182 = verf.f32 %v574_v57  ;;  %v573_v63 = vmul.f32 0.70710677, %v519_v10  ;;  %v1588_v0 = vadd.f32 %v1064_v39, %v1561_v17  ;;  %1100 = vmatprep.mubr.f32.mxu1 %v611_v59  ;;  %v597_v2 = vadd.f32 1.0, %v1169_v58 }
 0x237   :  { %v1171_v1 = vpop.eup %1170  ;;  %v528_v40 = vpop.f32.mrf.mxu0  ;;  %1101 = vmatmul.mubr.f32.vlgmr.msra.gmra.mxu1 %v612_v62  ;;  %v614_v9 = vmul.f32 %v598_v12, %v550_v3  ;;  %v557_v14 = vmul.f32 0.5, %v519_v10 }
 0x238   :  { %1184 = verf.f32 %v573_v63  ;;  %v576_v47 = vmul.f32 0.70710677, %v1588_v0  ;;  %v529_v34 = vadd.f32 %v1561_v17, %v528_v40  ;;  %v613_v4 = vmul.f32 %v597_v2, %v549_v46  ;;  %v1194_v2 = vld [vmem:[#allocation4 + $0x8] sm:$0xff] }
 0x239   :  { %v1173_v42 = vpop.eup %1172  ;;  %v1067_v31 = vpop.f32.mrf.mxu0  ;;  %v600_v5 = vadd.f32 1.0, %v1171_v1  ;;  %v560_v56 = vmul.f32 0.5, %v1588_v0  ;;  %v1602_v1 = vld [vmem:[%s1632_s6] ss:$0 sm:$0xff]  ;;  %s1294_s6 = smov [#allocation10]  }
 0x23a   :  { %1186 = verf.f32 %v576_v47  ;;  %v575_v6 = vmul.f32 0.70710677, %v529_v34  ;;  %v544_v7 = vadd.f32 %v1067_v31, %v1561_v17  ;;  %1103 = vmatprep.mubr.f32.mxu1 %v613_v4  ;;  %v599_v22 = vadd.f32 1.0, %v1173_v42  ;;  %v1195_v42 = vld [vmem:[#allocation4] sm:$0xff]  ;;  %s931_s20 = sshll.u32 %s1294_s6, 4  ;;  %s932_s20 = int_to_ptr.vmem [resolvable:$true] %s931_s20 }
 0x23b   :  { %v1175_v18 = vpop.eup %1174  ;;  %v538_v21 = vpop.f32.mrf.mxu0  ;;  %1104 = vmatmul.mubr.f32.gmra.mxu1 %v614_v9  ;;  %v616_v11 = vmul.f32 %v600_v5, %v552_v20  ;;  %v559_v27 = vmul.f32 0.5, %v529_v34  ;;  %v1197_v20 = vld [vmem:[#allocation4 + $0x10] sm:$0xff]  ;;  %s1263_s21 = scalar_lea.vmem %s932_s20, 2048  ;;  %p1268_p2 = scmp.lt.s32.totalorder %s932_s20, %s932_s20 }
 0x23c   :  { %1188 = verf.f32 %v575_v6  ;;  %v578_v23 = vmul.f32 0.70710677, %v544_v7  ;;  %v539_v50 = vadd.f32 %v1561_v17, %v538_v21  ;;  %v615_v26 = vmul.f32 %v599_v22, %v551_v41  ;;  %v1196_v6 = vld [vmem:[#allocation4 + $0x18] sm:$0xff]  ;;  %p1264_p1 = scmp.ne.s32.totalorder %s932_s20, %s1263_s21  ;;  %p1269_p3 = scmp.lt.s32.totalorder %s1263_s21, %s1263_s21 }
 0x23d   :  { %v1177_v24 = vpop.eup %1176  ;;  %v602_v33 = vadd.f32 1.0, %v1175_v18  ;;  %v562_v19 = vmul.f32 0.5, %v544_v7 }
 0x23e   :  { %1190 = verf.f32 %v578_v23  ;;  %v577_v28 = vmul.f32 0.70710677, %v539_v50  ;;  %v601_v29 = vadd.f32 1.0, %v1177_v24  ;;  %1106 = vmatprep.mubr.f32.mxu1 %v615_v26  ;;  %v561_v58 = vmul.f32 0.5, %v539_v50  ;;  %v1198_v23 = vld [vmem:[#allocation4 + $0x28] sm:$0xff]  ;;  %v1199_v26 = vld [vmem:[#allocation4 + $0x20] sm:$0xff]  ;;  %p1270_p4 = por %p1269_p3, %p1268_p2 }
 0x23f   :  { %v1179_v51 = vpop.eup %1178  ;;  %1107 = vmatmul.mubr.f32.gmra.mxu1 %v616_v11  ;;  %v618_v17 = vmul.f32 %v602_v33, %v554_v32  ;;  %v1200_v33 = vld [vmem:[#allocation4 + $0x38] sm:$0xff] }
 0x240   :  { %1192 = verf.f32 %v577_v28  ;;  %v617_v35 = vmul.f32 %v601_v29, %v553_v25  ;;  %v604_v13 = vadd.f32 1.0, %v1179_v51  ;;  %p1271_p5 = pnand %p1270_p4, %p1264_p1 }
 0x241   :  { %v1181_v60 = vpop.eup %1180 }
 0x242   :  { %1109 = vmatprep.mubr.f32.mxu1 %v617_v35  ;;  %v603_v38 = vadd.f32 1.0, %v1181_v60  ;;  %v620_v15 = vmul.f32 %v604_v13, %v556_v44  ;;  %v1201_v60 = vld [vmem:[#allocation4 + $0x30] sm:$0xff]  ;;  %v886_v13 = vld [vmem:[#allocation4 + $0x40] sm:$0xff] }
 0x243   :  { %v1183_v43 = vpop.eup %1182  ;;  %1110 = vmatmul.mubr.f32.gmra.mxu1 %v618_v17 }
 0x244   :  { %v619_v45 = vmul.f32 %v603_v38, %v555_v36  ;;  %v606_v49 = vadd.f32 1.0, %v1183_v43  ;;  %v1202_v43 = vld [vmem:[#allocation4 + $0x48] sm:$0xff] }
 0x245   :  { %v1185_v16 = vpop.eup %1184 }
 0x246   :  { %1112 = vmatprep.mubr.f32.mxu1 %v619_v45  ;;  %v605_v37 = vadd.f32 1.0, %v1185_v16  ;;  %v622_v53 = vmul.f32 %v606_v49, %v558_v30 }
 0x247   :  { %v1187_v52 = vpop.eup %1186  ;;  %1113 = vmatmul.mubr.f32.gmra.mxu1 %v620_v15 }
 0x248   :  { %v621_v48 = vmul.f32 %v605_v37, %v557_v14  ;;  %v608_v55 = vadd.f32 1.0, %v1187_v52  ;;  %v889_v14 = vld [vmem:[#allocation4 + $0x58] sm:$0xff]  ;;  %v888_v52 = vld [vmem:[#allocation4 + $0x50] sm:$0xff] }
 0x249   :  { %v1189_v8 = vpop.eup %1188 }
 0x24a   :  { %1115 = vmatprep.mubr.f32.mxu1 %v621_v48  ;;  %v607_v54 = vadd.f32 1.0, %v1189_v8  ;;  %v624_v39 = vmul.f32 %v608_v55, %v560_v56 }
 0x24b   :  { %v1191_v61 = vpop.eup %1190  ;;  %1116 = vmatmul.mubr.f32.gmra.mxu1 %v622_v53 }
 0x24c   :  { %v623_v57 = vmul.f32 %v607_v54, %v559_v27  ;;  %v610_v62 = vadd.f32 1.0, %v1191_v61  ;;  %v891_v27 = vld [vmem:[#allocation4 + $0x68] sm:$0xff]  ;;  %v890_v61 = vld [vmem:[#allocation4 + $0x60] sm:$0xff] }
 0x24d   :  { %v1193_v10 = vpop.eup %1192 }
 0x24e   :  { %1118 = vmatprep.mubr.f32.mxu1 %v623_v57  ;;  %v609_v59 = vadd.f32 1.0, %v1193_v10  ;;  %v626_v12 = vmul.f32 %v610_v62, %v562_v19  ;;  %v892_v19 = vld [vmem:[#allocation4 + $0x70] sm:$0xff] }
 0x24f   :  { %1119 = vmatmul.mubr.f32.gmra.mxu1 %v624_v39 }
 0x250   :  { %v625_v63 = vmul.f32 %v609_v59, %v561_v58  ;;  %v893_v58 = vld [vmem:[#allocation4 + $0x78] sm:$0xff] }
 0x252   :  { %1121 = vmatprep.mubr.f32.mxu1 %v625_v63 }
 0x253   :  { %1122 = vmatmul.mubr.f32.gmra.mxu1 %v626_v12 }
 0x2f7   :  { %v1102_v0 = vpop.f32.mrf.mxu1 }
 0x2f8   :  { %v863_v46 = vadd.f32 %v1102_v0, %v1602_v1 }
 0x2f9   :  { %v725_v40 = vpop.f32.mrf.mxu1 }
 0x2fa   :  { %v895_v3 = vadd.f32 %v1194_v2, %v863_v46  ;;  %v862_v47 = vadd.f32 %v1602_v1, %v725_v40 }
 0x2fb   :  { %v1105_v34 = vpop.f32.mrf.mxu1 }
 0x2fc   :  { %911 = vst [vmem:[#allocation10 + $0x8] sm:$0xff] %v895_v3  ;;  %v894_v31 = vadd.f32 %v1195_v42, %v862_v47  ;;  %v865_v4 = vadd.f32 %v1105_v34, %v1602_v1 }
 0x2fd   :  { %v735_v5 = vpop.f32.mrf.mxu1 }
 0x2fe   :  { %910 = vst [vmem:[#allocation10] sm:$0xff] %v894_v31  ;;  %v897_v7 = vadd.f32 %v1196_v6, %v865_v4  ;;  %v864_v9 = vadd.f32 %v1602_v1, %v735_v5 }
 0x2ff   :  { %v1108_v18 = vpop.f32.mrf.mxu1 }
 0x300   :  { %913 = vst [vmem:[#allocation10 + $0x18] sm:$0xff] %v897_v7  ;;  %v896_v41 = vadd.f32 %v1197_v20, %v864_v9  ;;  %v867_v21 = vadd.f32 %v1108_v18, %v1602_v1 }
 0x301   :  { %v745_v22 = vpop.f32.mrf.mxu1 }
 0x302   :  { %912 = vst [vmem:[#allocation10 + $0x10] sm:$0xff] %v896_v41  ;;  %v899_v50 = vadd.f32 %v1198_v23, %v867_v21  ;;  %v866_v24 = vadd.f32 %v1602_v1, %v745_v22 }
 0x303   :  { %v1111_v25 = vpop.f32.mrf.mxu1 }
 0x304   :  { %915 = vst [vmem:[#allocation10 + $0x28] sm:$0xff] %v899_v50  ;;  %v898_v11 = vadd.f32 %v1199_v26, %v866_v24  ;;  %v869_v28 = vadd.f32 %v1111_v25, %v1602_v1 }
 0x305   :  { %v755_v29 = vpop.f32.mrf.mxu1 }
 0x306   :  { %914 = vst [vmem:[#allocation10 + $0x20] sm:$0xff] %v898_v11  ;;  %v901_v51 = vadd.f32 %v1200_v33, %v869_v28  ;;  %v868_v32 = vadd.f32 %v1602_v1, %v755_v29 }
 0x307   :  { %v1114_v35 = vpop.f32.mrf.mxu1 }
 0x308   :  { %917 = vst [vmem:[#allocation10 + $0x38] sm:$0xff] %v901_v51  ;;  %v900_v36 = vadd.f32 %v1201_v60, %v868_v32  ;;  %v871_v17 = vadd.f32 %v1114_v35, %v1602_v1 }
 0x309   :  { %v765_v38 = vpop.f32.mrf.mxu1 }
 0x30a   :  { %916 = vst [vmem:[#allocation10 + $0x30] sm:$0xff] %v900_v36  ;;  %v903_v44 = vadd.f32 %v1202_v43, %v871_v17  ;;  %v870_v45 = vadd.f32 %v1602_v1, %v765_v38 }
 0x30b   :  { %v1117_v16 = vpop.f32.mrf.mxu1 }
 0x30c   :  { %919 = vst [vmem:[#allocation10 + $0x48] sm:$0xff] %v903_v44  ;;  %v902_v15 = vadd.f32 %v886_v13, %v870_v45  ;;  %v873_v37 = vadd.f32 %v1117_v16, %v1602_v1 }
 0x30d   :  { %v775_v49 = vpop.f32.mrf.mxu1 }
 0x30e   :  { %918 = vst [vmem:[#allocation10 + $0x40] sm:$0xff] %v902_v15  ;;  %v905_v30 = vadd.f32 %v889_v14, %v873_v37  ;;  %v872_v48 = vadd.f32 %v1602_v1, %v775_v49 }
 0x30f   :  { %v1120_v8 = vpop.f32.mrf.mxu1 }
 0x310   :  { %921 = vst [vmem:[#allocation10 + $0x58] sm:$0xff] %v905_v30  ;;  %v904_v53 = vadd.f32 %v888_v52, %v872_v48  ;;  %v875_v54 = vadd.f32 %v1120_v8, %v1602_v1 }
 0x311   :  { %v785_v55 = vpop.f32.mrf.mxu1 }
 0x312   :  { %920 = vst [vmem:[#allocation10 + $0x50] sm:$0xff] %v904_v53  ;;  %v907_v56 = vadd.f32 %v891_v27, %v875_v54  ;;  %v874_v57 = vadd.f32 %v1602_v1, %v785_v55 }
 0x313   :  { %v1123_v10 = vpop.f32.mrf.mxu1 }
 0x314   :  { %923 = vst [vmem:[#allocation10 + $0x68] sm:$0xff] %v907_v56  ;;  %v906_v39 = vadd.f32 %v890_v61, %v874_v57  ;;  %v877_v59 = vadd.f32 %v1123_v10, %v1602_v1 }
 0x315   :  { %v795_v62 = vpop.f32.mrf.mxu1 }
 0x316   :  { %922 = vst [vmem:[#allocation10 + $0x60] sm:$0xff] %v906_v39  ;;  %v909_v63 = vadd.f32 %v893_v58, %v877_v59  ;;  %v876_v12 = vadd.f32 %v1602_v1, %v795_v62 }
 0x318   :  { %925 = vst [vmem:[#allocation10 + $0x78] sm:$0xff] %v909_v63  ;;  %v908_v0 = vadd.f32 %v892_v19, %v876_v12 }
 0x31a   :  { %924 = vst [vmem:[#allocation10 + $0x70] sm:$0xff] %v908_v0 }
 0x31b   :  { %1274 = shalt.err (!%p1271_p5)
}
 0x31c   :  { %937 = dma.vmem_to_hbm [thread:$0]  %s932_s20, 2048, %s1633_s7, [#allocation6], %s1291_s29, %s1291_s29, %s1292_s30  }
 0x31d   :  { %1287 = dma.done.wait [#allocation6], 2048  }
 0x31e   :  { %1288 = vsyncadd [#allocation6], 4294965248 }
 0x31f   :  { %941 = vsyncpa [#allocation5], 1 }
 0x320   :  { %942 = vsyncpa [#allocation8], 1 }
 0x321   :  { %943 = vsyncpa [#allocation6], 1 }

</bundles_post_ra>
